<compile_context>
chip_gen: v7x
topology: tpu7x:2x2x1
jax: 0.10.0
libtpu: 0.0.40
codegen_flags: <defaults>
</compile_context>

<pallas_src>
import jax
import jax.numpy as jnp
from jax.experimental import pallas as pl
from jax.experimental.pallas import tpu as pltpu

IN_FEATURES = 5184   # 64 * 9 * 9
HIDDEN = 256
OUT_FEATURES = 1
TB = 16              # batch tile (bf16 sublane pack = 16 rows)


def linear_model_kernel(x_ref, w1_ref, b1_ref, w2_ref, b2_ref, o_ref):
    # Dropout(0.25) in eval mode is the identity.
    # TODO(synk): training-mode dropout (pltpu.prng_random_bits mask + 1/(1-p) scale) not implemented.
    x = x_ref[...]                                    # (TB, 5184) bf16
    w1 = w1_ref[...]                                  # (5184, 256) bf16 (grid-invariant)
    # MXU matmul, bf16 inputs, f32 accumulation.
    h = jnp.dot(x, w1, preferred_element_type=jnp.float32)        # (TB, 256) f32
    # Bias + tanh kept in f32 (EUP transcendental; correct on v5e/v6e/v7x).
    h = jnp.tanh(h + b1_ref[...])                                 # (TB, 256) f32
    # 256 -> 1 projection: VPU multiply + lane reduction (avoid 1-wide MXU matmul).
    y = jnp.sum(h * w2_ref[...], axis=-1, keepdims=True)          # (TB, 1) f32
    o_ref[...] = y + b2_ref[...]


def linear_model_forward(x_flat, w1_bf16, b1, w2_row, b2):
    """x_flat: (B, 5184) f32/bf16; w1_bf16: (5184, 256) bf16; b1: (1, 256) f32;
    w2_row: (1, 256) f32; b2: (1, 1) f32. Returns (B, 1) f32."""
    B = x_flat.shape[0]
    B_pad = ((B + TB - 1) // TB) * TB
    if B_pad != B:
        x_flat = jnp.pad(x_flat, ((0, B_pad - B), (0, 0)))
    x_bf16 = x_flat.astype(jnp.bfloat16)

    out = pl.pallas_call(
        linear_model_kernel,
        out_shape=jax.ShapeDtypeStruct((B_pad, OUT_FEATURES), jnp.float32),
        grid=(B_pad // TB,),
        in_specs=[
            pl.BlockSpec((TB, IN_FEATURES), lambda i: (i, 0)),        # x tile
            pl.BlockSpec((IN_FEATURES, HIDDEN), lambda i: (0, 0)),    # w1 (whole, reused)
            pl.BlockSpec((1, HIDDEN), lambda i: (0, 0)),              # b1
            pl.BlockSpec((1, HIDDEN), lambda i: (0, 0)),              # w2 row
            pl.BlockSpec((1, OUT_FEATURES), lambda i: (0, 0)),        # b2
        ],
        out_specs=pl.BlockSpec((TB, OUT_FEATURES), lambda i: (i, 0)),
        compiler_params=pltpu.CompilerParams(
            dimension_semantics=("parallel",),
            vmem_limit_bytes=16 << 20,
        ),
    )(x_bf16, w1_bf16, b1, w2_row, b2)
    return out[:B]


def init_params(key):
    # Deterministic init mimicking PyTorch Linear default: U(-1/sqrt(fan_in), 1/sqrt(fan_in)).
    k1, k2, k3, k4 = jax.random.split(key, 4)
    bound1 = 1.0 / jnp.sqrt(jnp.float32(IN_FEATURES))
    bound2 = 1.0 / jnp.sqrt(jnp.float32(HIDDEN))
    # w1 is stored in bf16 (halves the HBM weight traffic, the kernel's only real cost).
    w1 = jax.random.uniform(k1, (IN_FEATURES, HIDDEN), jnp.float32, -bound1, bound1).astype(jnp.bfloat16)
    b1 = jax.random.uniform(k2, (1, HIDDEN), jnp.float32, -bound1, bound1)
    w2_row = jax.random.uniform(k3, (1, HIDDEN), jnp.float32, -bound2, bound2)   # PyTorch (out,in)=(1,256)
    b2 = jax.random.uniform(k4, (1, OUT_FEATURES), jnp.float32, -bound2, bound2)
    return w1, b1, w2_row, b2


if __name__ == "__main__":
    key = jax.random.PRNGKey(0)
    k_x, k_p = jax.random.split(key)

    # Small-but-consistent input: (B, C, H, W) = (2, 64, 9, 9) -> flattened feature dim 5184.
    B, C, H, W = 2, 64, 9, 9
    x = jax.random.normal(k_x, (B, C, H, W), jnp.float32)

    w1_bf16, b1, w2_row, b2 = init_params(k_p)

    # Glue: flatten(start_dim=1), same row-major order as torch.flatten.
    x_flat = x.reshape(B, C * H * W)

    out = jax.block_until_ready(linear_model_forward(x_flat, w1_bf16, b1, w2_row, b2))

    # Reference in plain JAX with the same bf16-cast operands and f32 math
    # (eval-mode dropout == identity), so only accumulation order differs.
    xb = x_flat.astype(jnp.bfloat16).astype(jnp.float32)
    w1f = w1_bf16.astype(jnp.float32)
    h_ref = jnp.tanh(xb @ w1f + b1)
    ref = jnp.sum(h_ref * w2_row, axis=-1, keepdims=True) + b2

    assert out.shape == (B, 1)
    assert jnp.allclose(out, ref, atol=1e-3, rtol=1e-3)

    print("KERNEL_OK")
</pallas_src>

<mosaic_0001>
module attributes {stable_mosaic.version = 11 : i64} {
  func.func @linear_model_kernel(%arg0: i32, %arg1: memref<16x5184xbf16, #tpu.memory_space<vmem>>, %arg2: memref<5184x256xbf16, #tpu.memory_space<vmem>>, %arg3: memref<1x256xf32, #tpu.memory_space<vmem>>, %arg4: memref<1x256xf32, #tpu.memory_space<vmem>>, %arg5: memref<1x1xf32, #tpu.memory_space<vmem>>, %arg6: memref<16x1xf32, #tpu.memory_space<vmem>>) attributes {dimension_semantics = [#tpu.dimension_semantics<parallel>], iteration_bounds = array<i64: 1>, scalar_prefetch = 0 : i64, scratch_operands = 0 : i64, tpu.core_type = #tpu.core_type<tc>, window_params = [{transform_indices = @transform_0, window_bounds = array<i64: 16, 5184>}, {pipeline_mode = #tpu.pipeline_mode<synchronous>, transform_indices = @transform_1, window_bounds = array<i64: 5184, 256>}, {pipeline_mode = #tpu.pipeline_mode<synchronous>, transform_indices = @transform_2, window_bounds = array<i64: 1, 256>}, {pipeline_mode = #tpu.pipeline_mode<synchronous>, transform_indices = @transform_3, window_bounds = array<i64: 1, 256>}, {pipeline_mode = #tpu.pipeline_mode<synchronous>, transform_indices = @transform_4, window_bounds = array<i64: 1, 1>}, {transform_indices = @transform_5, window_bounds = array<i64: 16, 1>}]} {
    %c0 = arith.constant 0 : index
    %c0_0 = arith.constant 0 : index
    %0 = vector.load %arg1[%c0, %c0_0] : memref<16x5184xbf16, #tpu.memory_space<vmem>>, vector<16x5184xbf16>
    %c0_1 = arith.constant 0 : index
    %c0_2 = arith.constant 0 : index
    %1 = vector.load %arg2[%c0_1, %c0_2] : memref<5184x256xbf16, #tpu.memory_space<vmem>>, vector<5184x256xbf16>
    %cst = arith.constant dense<0.000000e+00> : vector<16x256xf32>
    %2 = tpu.matmul %0, %1, %cst {dimension_numbers = #tpu.dot_dimension_numbers<[1], [0], [0], [1], [0, 0, 1, 1], [], []>} : vector<16x5184xbf16>, vector<5184x256xbf16>, vector<16x256xf32> -> vector<16x256xf32>
    %c0_3 = arith.constant 0 : index
    %c0_4 = arith.constant 0 : index
    %3 = vector.load %arg3[%c0_3, %c0_4] : memref<1x256xf32, #tpu.memory_space<vmem>>, vector<1x256xf32>
    %4 = vector.broadcast %3 : vector<1x256xf32> to vector<16x256xf32>
    %5 = arith.addf %2, %4 : vector<16x256xf32>
    %6 = math.tanh %5 : vector<16x256xf32>
    %c0_5 = arith.constant 0 : index
    %c0_6 = arith.constant 0 : index
    %7 = vector.load %arg4[%c0_5, %c0_6] : memref<1x256xf32, #tpu.memory_space<vmem>>, vector<1x256xf32>
    %8 = vector.broadcast %7 : vector<1x256xf32> to vector<16x256xf32>
    %9 = arith.mulf %6, %8 : vector<16x256xf32>
    %cst_7 = arith.constant dense<0.000000e+00> : vector<16xf32>
    %10 = vector.multi_reduction <add>, %9, %cst_7 [1] : vector<16x256xf32> to vector<16xf32>
    %11 = vector.shape_cast %10 : vector<16xf32> to vector<16x1xf32>
    %c0_8 = arith.constant 0 : index
    %c0_9 = arith.constant 0 : index
    %12 = vector.load %arg5[%c0_8, %c0_9] : memref<1x1xf32, #tpu.memory_space<vmem>>, vector<1x1xf32>
    %13 = vector.broadcast %12 : vector<1x1xf32> to vector<16x1xf32>
    %14 = arith.addf %11, %13 : vector<16x1xf32>
    %c0_10 = arith.constant 0 : index
    %c0_11 = arith.constant 0 : index
    %15 = vector.load %arg6[%c0_10, %c0_11] : memref<16x1xf32, #tpu.memory_space<vmem>>, vector<16x1xf32>
    tpu.vector_store %arg6[%c0_10, %c0_11], %14 {strides = array<i32>} : memref<16x1xf32, #tpu.memory_space<vmem>>, vector<16x1xf32>,
    return
  }
  func.func @transform_0(%arg0: i32) -> (i32, i32) {
    %c0_i32 = arith.constant 0 : i32
    %c0_i32_0 = arith.constant 0 : i32
    return %arg0, %c0_i32 : i32, i32
  }
  func.func @transform_1(%arg0: i32) -> (i32, i32) {
    %c0_i32 = arith.constant 0 : i32
    %c0_i32_0 = arith.constant 0 : i32
    %c0_i32_1 = arith.constant 0 : i32
    return %c0_i32, %c0_i32_0 : i32, i32
  }
  func.func @transform_2(%arg0: i32) -> (i32, i32) {
    %c0_i32 = arith.constant 0 : i32
    %c0_i32_0 = arith.constant 0 : i32
    %c0_i32_1 = arith.constant 0 : i32
    return %c0_i32, %c0_i32_0 : i32, i32
  }
  func.func @transform_3(%arg0: i32) -> (i32, i32) {
    %c0_i32 = arith.constant 0 : i32
    %c0_i32_0 = arith.constant 0 : i32
    %c0_i32_1 = arith.constant 0 : i32
    return %c0_i32, %c0_i32_0 : i32, i32
  }
  func.func @transform_4(%arg0: i32) -> (i32, i32) {
    %c0_i32 = arith.constant 0 : i32
    %c0_i32_0 = arith.constant 0 : i32
    %c0_i32_1 = arith.constant 0 : i32
    return %c0_i32, %c0_i32_0 : i32, i32
  }
  func.func @transform_5(%arg0: i32) -> (i32, i32) {
    %c0_i32 = arith.constant 0 : i32
    %c0_i32_0 = arith.constant 0 : i32
    return %arg0, %c0_i32 : i32, i32
  }
}

</mosaic_0001>

<bundles_post_ra>
// kernel: tpu_custom_call.1
= control target key start
LH: loop header
LB: loop body
LE: loop exit
PB: predicated region body
PF: predicated region fallthrough
CT: control target
= control target key end

     0   :  { %s7188_s0 = inlined_call_operand.hbm [shape: bf16[16,5184], index: 0, kind: input, shape index: {}]   ;;  %s7189_s1 = inlined_call_operand.hbm [shape: bf16[5184,256], index: 1, kind: input, shape index: {}]   ;;  %s7190_s2 = inlined_call_operand.hbm [shape: f32[1,256], index: 2, kind: input, shape index: {}]   ;;  %s7191_s3 = inlined_call_operand.hbm [shape: f32[1,256], index: 3, kind: input, shape index: {}]   ;;  %s7192_s4 = inlined_call_operand.<no memory space> [shape: f32[1,1], index: 4, kind: input, shape index: {}]   ;;  %s7193_s5 = inlined_call_operand.vmem [shape: f32[16,1], index: 5, kind: output, shape index: {}]  }
   0x1   :  { %v10_v0 = vstv %s7192_s4 }
   0x2   :  { %11 = vst [vmem:[#allocation2] sm:$0x1] %v10_v0 }
   0x3   :  { %12 = vsyncpa [#allocation4], 0 }
   0x4   :  { %13 = vsyncpa [#allocation6], 0 }
   0x5   :  { %14 = vsyncpa [#allocation9], 0  ;;  %s7092_s20 = smov [#allocation5]   ;;  %s6998_s24 = scalar_lea.hbm %s7189_s1, 82944 }
   0x6   :  { %s32_s21 = sshll.u32 %s7092_s20, 4  ;;  %p6999_p0 = scmp.ne.s32.totalorder %s7189_s1, %s6998_s24  ;;  %s33_s21 = int_to_ptr.vmem [resolvable:$true] %s32_s21 }
   0x7   :  { %p7002_p1 = scmp.lt.u32.totalorder %s6998_s24, %s7189_s1 }
   0x9   :  { %p7004_p2 = pnand %p7002_p1, %p6999_p0 }
   0xb   :  { %7007 = shalt.err (!%p7004_p2)
}
   0xc   :  { %s7008_s4 = scalar_lea.vmem %s33_s21, 82944  ;;  %p7013_p4 = scmp.lt.s32.totalorder %s33_s21, %s33_s21 }
   0xd   :  { %p7009_p3 = scmp.ne.s32.totalorder %s33_s21, %s7008_s4  ;;  %p7014_p5 = scmp.lt.s32.totalorder %s7008_s4, %s7008_s4 }
   0xf   :  { %p7015_p6 = por %p7014_p5, %p7013_p4 }
  0x11   :  { %p7016_p7 = pnand %p7015_p6, %p7009_p3 }
  0x13   :  { %7019 = shalt.err (!%p7016_p7)
}
  0x14   :  { %s7093_s29 = smov 128   ;;  %s7094_s30 = smov 8  }
  0x15   :  { %38 = dma.hbm_to_vmem [thread:$0]  %s7189_s1, 82944, %s33_s21, [#allocation6], %s7093_s29, %s7093_s29, %s7094_s30  }
  0x16   :  { %s7095_s8 = smov [#allocation3]   ;;  %s7020_s12 = scalar_lea.hbm %s7188_s0, 5248 }
  0x17   :  { %s20_s9 = sshll.u32 %s7095_s8, 4  ;;  %p7021_p8 = scmp.ne.s32.totalorder %s7188_s0, %s7020_s12  ;;  %s21_s9 = int_to_ptr.vmem [resolvable:$true] %s20_s9 }
  0x18   :  { %p7024_p9 = scmp.lt.u32.totalorder %s7020_s12, %s7188_s0 }
  0x1a   :  { %p7026_p10 = pnand %p7024_p9, %p7021_p8 }
  0x1c   :  { %7029 = shalt.err (!%p7026_p10)
}
  0x1d   :  { %s7030_s17 = scalar_lea.vmem %s21_s9, 5248  ;;  %p7035_p12 = scmp.lt.s32.totalorder %s21_s9, %s21_s9 }
  0x1e   :  { %p7031_p11 = scmp.ne.s32.totalorder %s21_s9, %s7030_s17  ;;  %p7036_p13 = scmp.lt.s32.totalorder %s7030_s17, %s7030_s17 }
  0x20   :  { %p7037_p0 = por %p7036_p13, %p7035_p12 }
  0x22   :  { %p7038_p1 = pnand %p7037_p0, %p7031_p11 }
  0x24   :  { %7041 = shalt.err (!%p7038_p1)
}
  0x25   :  { %s7096_s1 = smov 2624   ;;  %s7097_s18 = smov 164  }
  0x26   :  { %26 = dma.hbm_to_vmem [thread:$0]  %s7188_s0, 5248, %s21_s9, [#allocation4], %s7096_s1, %s7096_s1, %s7097_s18  }
  0x27   :  { %s7098_s21 = smov [#allocation7]   ;;  %s7099_s23 = smov [#allocation8]  }
  0x28   :  { %s45_s22 = sshll.u32 %s7098_s21, 4  ;;  %s55_s24 = sshll.u32 %s7099_s23, 4  ;;  %s46_s22 = int_to_ptr.vmem [resolvable:$true] %s45_s22  ;;  %s56_s24 = int_to_ptr.vmem [resolvable:$true] %s55_s24 }
  0x29   :  { %s7042_s27 = scalar_lea.hbm %s7190_s2, 32 }
  0x2a   :  { %p7043_p2 = scmp.ne.s32.totalorder %s7190_s2, %s7042_s27  ;;  %p7046_p3 = scmp.lt.u32.totalorder %s7042_s27, %s7190_s2 }
  0x2c   :  { %p7048_p4 = pnand %p7046_p3, %p7043_p2 }
  0x2e   :  { %7051 = shalt.err (!%p7048_p4)
}
  0x2f   :  { %s7052_s0 = scalar_lea.vmem %s46_s22, 32  ;;  %p7057_p6 = scmp.lt.s32.totalorder %s46_s22, %s46_s22 }
  0x30   :  { %p7053_p5 = scmp.ne.s32.totalorder %s46_s22, %s7052_s0  ;;  %p7058_p7 = scmp.lt.s32.totalorder %s7052_s0, %s7052_s0 }
  0x32   :  { %p7059_p8 = por %p7058_p7, %p7057_p6 }
  0x34   :  { %p7060_p9 = pnand %p7059_p8, %p7053_p5 }
  0x36   :  { %7063 = shalt.err (!%p7060_p9)
}
  0x37   :  { %48 = dma.hbm_to_vmem [thread:$0]  %s7190_s2, 32, %s46_s22, [#allocation6]  }
  0x38   :  { %s7064_s10 = scalar_lea.hbm %s7191_s3, 32 }
  0x39   :  { %p7065_p10 = scmp.ne.s32.totalorder %s7191_s3, %s7064_s10  ;;  %p7068_p11 = scmp.lt.u32.totalorder %s7064_s10, %s7191_s3 }
  0x3b   :  { %p7070_p12 = pnand %p7068_p11, %p7065_p10 }
  0x3d   :  { %7073 = shalt.err (!%p7070_p12)
}
  0x3e   :  { %s7074_s15 = scalar_lea.vmem %s56_s24, 32  ;;  %p7079_p0 = scmp.lt.s32.totalorder %s56_s24, %s56_s24 }
  0x3f   :  { %p7075_p13 = scmp.ne.s32.totalorder %s56_s24, %s7074_s15  ;;  %p7080_p1 = scmp.lt.s32.totalorder %s7074_s15, %s7074_s15 }
  0x41   :  { %p7081_p2 = por %p7080_p1, %p7079_p0 }
  0x43   :  { %p7082_p3 = pnand %p7081_p2, %p7075_p13 }
  0x45   :  { %7085 = shalt.err (!%p7082_p3)
}
  0x46   :  { %58 = dma.hbm_to_vmem [thread:$0]  %s7191_s3, 32, %s56_s24, [#allocation9]  }
  0x47   :  { %7086 = dma.done.wait [#allocation4], 5248  }
  0x48   :  { %7087 = vsyncadd [#allocation4], 4294962048 }
  0x49   :  { %7088 = dma.done.wait [#allocation6], 82976  }
  0x4a   :  { %7089 = vsyncadd [#allocation6], 4294884320 }
  0x4b   :  { %7090 = dma.done.wait [#allocation9], 32  }
  0x4c   :  { %7091 = vsyncadd [#allocation9], 4294967264  ;;  %v5957_v1 = vld [vmem:[#allocation5 + $0x4] ss:$8 sps:$4 sm:$0xff]   ;;  %v5961_v3 = vld [vmem:[#allocation5] ss:$8 sps:$4 sm:$0xff]  }
  0x4d   :  { %v5959_v2 = vld [vmem:[#allocation5 + $0xa04] ss:$8 sps:$4 sm:$0xff]   ;;  %4225 = vmatprep.subr.bf16.mxu1 %v5957_v1  ;;  %v5962_v4 = vld [vmem:[#allocation5 + $0xa00] ss:$8 sps:$4 sm:$0xff]   ;;  %v5963_v5 = vld [vmem:[#allocation5 + $0x14] ss:$8 sps:$4 sm:$0xff]  }
  0x4e   :  { %4655 = vmatprep.subr.bf16.mxu0 %v5959_v2  ;;  %4226 = vmatpush1.bf16.msra.mxu1 %v5961_v3  ;;  %v5965_v6 = vld [vmem:[#allocation5 + $0xa14] ss:$8 sps:$4 sm:$0xff]   ;;  %v5967_v7 = vld [vmem:[#allocation5 + $0x10] ss:$8 sps:$4 sm:$0xff]   ;;  %v5969_v9 = vld [vmem:[#allocation5 + $0x24] ss:$8 sps:$4 sm:$0xff]  }
  0x4f   :  { %4656 = vmatpush1.bf16.msra.mxu0 %v5962_v4  ;;  %4227 = vmatprep.subr.bf16.mxu1 %v5963_v5  ;;  %v5968_v8 = vld [vmem:[#allocation5 + $0xa10] ss:$8 sps:$4 sm:$0xff]   ;;  %v5971_v10 = vld [vmem:[#allocation5 + $0xa24] ss:$8 sps:$4 sm:$0xff]   ;;  %v5973_v11 = vld [vmem:[#allocation5 + $0x20] ss:$8 sps:$4 sm:$0xff]  }
  0x50   :  { %4657 = vmatprep.subr.bf16.mxu0 %v5965_v6  ;;  %v5974_v12 = vld [vmem:[#allocation5 + $0xa20] ss:$8 sps:$4 sm:$0xff]   ;;  %v5975_v13 = vld [vmem:[#allocation5 + $0x34] ss:$8 sps:$4 sm:$0xff]   ;;  %v5979_v15 = vld [vmem:[#allocation5 + $0x30] ss:$8 sps:$4 sm:$0xff]  }
  0x51   :  { %v5977_v14 = vld [vmem:[#allocation5 + $0xa34] ss:$8 sps:$4 sm:$0xff]   ;;  %v5980_v16 = vld [vmem:[#allocation5 + $0xa30] ss:$8 sps:$4 sm:$0xff]   ;;  %v5981_v17 = vld [vmem:[#allocation5 + $0x44] ss:$8 sps:$4 sm:$0xff]  }
  0x52   :  { %4228 = vmatpush1.bf16.msra.mxu1 %v5967_v7  ;;  %v5983_v18 = vld [vmem:[#allocation5 + $0xa44] ss:$8 sps:$4 sm:$0xff]   ;;  %v5985_v19 = vld [vmem:[#allocation5 + $0x40] ss:$8 sps:$4 sm:$0xff]   ;;  %v5987_v21 = vld [vmem:[#allocation5 + $0x54] ss:$8 sps:$4 sm:$0xff]  }
  0x53   :  { %4658 = vmatpush1.bf16.msra.mxu0 %v5968_v8  ;;  %4229 = vmatprep.subr.bf16.mxu1 %v5969_v9  ;;  %v5986_v20 = vld [vmem:[#allocation5 + $0xa40] ss:$8 sps:$4 sm:$0xff]   ;;  %v5989_v22 = vld [vmem:[#allocation5 + $0xa54] ss:$8 sps:$4 sm:$0xff]   ;;  %v5991_v23 = vld [vmem:[#allocation5 + $0x50] ss:$8 sps:$4 sm:$0xff]  }
  0x54   :  { %4659 = vmatprep.subr.bf16.mxu0 %v5971_v10  ;;  %v5992_v24 = vld [vmem:[#allocation5 + $0xa50] ss:$8 sps:$4 sm:$0xff]   ;;  %v5993_v25 = vld [vmem:[#allocation5 + $0x64] ss:$8 sps:$4 sm:$0xff]   ;;  %v5997_v27 = vld [vmem:[#allocation5 + $0x60] ss:$8 sps:$4 sm:$0xff]  }
  0x55   :  { %v5995_v26 = vld [vmem:[#allocation5 + $0xa64] ss:$8 sps:$4 sm:$0xff]   ;;  %v5998_v28 = vld [vmem:[#allocation5 + $0xa60] ss:$8 sps:$4 sm:$0xff]   ;;  %v5999_v29 = vld [vmem:[#allocation5 + $0x74] ss:$8 sps:$4 sm:$0xff]  }
  0x56   :  { %4230 = vmatpush1.bf16.msra.mxu1 %v5973_v11  ;;  %v6001_v30 = vld [vmem:[#allocation5 + $0xa74] ss:$8 sps:$4 sm:$0xff]   ;;  %v6003_v31 = vld [vmem:[#allocation5 + $0x70] ss:$8 sps:$4 sm:$0xff]   ;;  %v6005_v33 = vld [vmem:[#allocation5 + $0x84] ss:$8 sps:$4 sm:$0xff]  }
  0x57   :  { %4660 = vmatpush1.bf16.msra.mxu0 %v5974_v12  ;;  %4231 = vmatprep.subr.bf16.mxu1 %v5975_v13  ;;  %v6004_v32 = vld [vmem:[#allocation5 + $0xa70] ss:$8 sps:$4 sm:$0xff]   ;;  %v6007_v34 = vld [vmem:[#allocation5 + $0xa84] ss:$8 sps:$4 sm:$0xff]   ;;  %v6009_v35 = vld [vmem:[#allocation5 + $0x80] ss:$8 sps:$4 sm:$0xff]  }
  0x58   :  { %4661 = vmatprep.subr.bf16.mxu0 %v5977_v14  ;;  %v6010_v36 = vld [vmem:[#allocation5 + $0xa80] ss:$8 sps:$4 sm:$0xff]   ;;  %v6011_v37 = vld [vmem:[#allocation5 + $0x94] ss:$8 sps:$4 sm:$0xff]   ;;  %v6015_v39 = vld [vmem:[#allocation5 + $0x90] ss:$8 sps:$4 sm:$0xff]  }
  0x59   :  { %v6013_v38 = vld [vmem:[#allocation5 + $0xa94] ss:$8 sps:$4 sm:$0xff]   ;;  %v6016_v40 = vld [vmem:[#allocation5 + $0xa90] ss:$8 sps:$4 sm:$0xff]   ;;  %v6017_v41 = vld [vmem:[#allocation5 + $0xa4] ss:$8 sps:$4 sm:$0xff]  }
  0x5a   :  { %4232 = vmatpush1.bf16.msra.mxu1 %v5979_v15  ;;  %v6019_v42 = vld [vmem:[#allocation5 + $0xaa4] ss:$8 sps:$4 sm:$0xff]   ;;  %v6021_v43 = vld [vmem:[#allocation5 + $0xa0] ss:$8 sps:$4 sm:$0xff]   ;;  %v6023_v45 = vld [vmem:[#allocation5 + $0xb4] ss:$8 sps:$4 sm:$0xff]  }
  0x5b   :  { %4662 = vmatpush1.bf16.msra.mxu0 %v5980_v16  ;;  %4233 = vmatprep.subr.bf16.mxu1 %v5981_v17  ;;  %v6022_v44 = vld [vmem:[#allocation5 + $0xaa0] ss:$8 sps:$4 sm:$0xff]   ;;  %v6025_v46 = vld [vmem:[#allocation5 + $0xab4] ss:$8 sps:$4 sm:$0xff]   ;;  %v6027_v47 = vld [vmem:[#allocation5 + $0xb0] ss:$8 sps:$4 sm:$0xff]  }
  0x5c   :  { %4663 = vmatprep.subr.bf16.mxu0 %v5983_v18  ;;  %v6028_v48 = vld [vmem:[#allocation5 + $0xab0] ss:$8 sps:$4 sm:$0xff]   ;;  %v6055_v49 = vld [vmem:[#allocation3 + $0x4] ss:$164 sps:$4 sm:$0xff]   ;;  %v6029_v50 = vld [vmem:[#allocation5 + $0xc4] ss:$8 sps:$4 sm:$0xff]  }
  0x5d   :  { %v6031_v51 = vld [vmem:[#allocation5 + $0xac4] ss:$8 sps:$4 sm:$0xff]   ;;  %4257 = vmatprep.mubr.bf16.mxu1 %v6055_v49  ;;  %v6033_v53 = vld [vmem:[#allocation5 + $0xc0] ss:$8 sps:$4 sm:$0xff]   ;;  %v6035_v55 = vld [vmem:[#allocation5 + $0xd4] ss:$8 sps:$4 sm:$0xff]  }
  0x5e   :  { %4234 = vmatpush1.bf16.msra.mxu1 %v5985_v19  ;;  %v6061_v52 = vld [vmem:[#allocation3 + $0x54] ss:$164 sps:$4 sm:$0xff]   ;;  %v6034_v54 = vld [vmem:[#allocation5 + $0xac0] ss:$8 sps:$4 sm:$0xff]   ;;  %v6037_v56 = vld [vmem:[#allocation5 + $0xad4] ss:$8 sps:$4 sm:$0xff]  }
  0x5f   :  { %4664 = vmatpush1.bf16.msra.mxu0 %v5986_v20  ;;  %4235 = vmatprep.subr.bf16.mxu1 %v5987_v21  ;;  %v6039_v57 = vld [vmem:[#allocation5 + $0xd0] ss:$8 sps:$4 sm:$0xff]   ;;  %v6041_v59 = vld [vmem:[#allocation5 + $0xe4] ss:$8 sps:$4 sm:$0xff]   ;;  %v6045_v61 = vld [vmem:[#allocation5 + $0xe0] ss:$8 sps:$4 sm:$0xff]  }
  0x60   :  { %4665 = vmatprep.subr.bf16.mxu0 %v5989_v22  ;;  %4687 = vmatprep.mubr.bf16.mxu0 %v6061_v52  ;;  %v6040_v58 = vld [vmem:[#allocation5 + $0xad0] ss:$8 sps:$4 sm:$0xff]   ;;  %v6043_v60 = vld [vmem:[#allocation5 + $0xae4] ss:$8 sps:$4 sm:$0xff]   ;;  %v6046_v62 = vld [vmem:[#allocation5 + $0xae0] ss:$8 sps:$4 sm:$0xff]  }
  0x61   :  { %v6047_v63 = vld [vmem:[#allocation5 + $0xf4] ss:$8 sps:$4 sm:$0xff]   ;;  %v6051_v1 = vld [vmem:[#allocation5 + $0xf0] ss:$8 sps:$4 sm:$0xff]   ;;  %v6058_v3 = vld [vmem:[#allocation5 + $0x104] ss:$8 sps:$4 sm:$0xff]  }
  0x62   :  { %4236 = vmatpush1.bf16.msra.mxu1 %v5991_v23  ;;  %v6049_v0 = vld [vmem:[#allocation5 + $0xaf4] ss:$8 sps:$4 sm:$0xff]   ;;  %v6052_v2 = vld [vmem:[#allocation5 + $0xaf0] ss:$8 sps:$4 sm:$0xff]   ;;  %v6064_v4 = vld [vmem:[#allocation5 + $0xb04] ss:$8 sps:$4 sm:$0xff]  }
  0x63   :  { %4666 = vmatpush1.bf16.msra.mxu0 %v5992_v24  ;;  %4237 = vmatprep.subr.bf16.mxu1 %v5993_v25  ;;  %v6053_v5 = vld [vmem:[#allocation3] ss:$164 sps:$4 sm:$0xff]   ;;  %v6056_v6 = vld [vmem:[#allocation5 + $0x100] ss:$8 sps:$4 sm:$0xff]   ;;  %v6073_v13 = vld [vmem:[#allocation5 + $0x124] ss:$8 sps:$4 sm:$0xff]  }
  0x64   :  { %4667 = vmatprep.subr.bf16.mxu0 %v5995_v26  ;;  %v6059_v7 = vld [vmem:[#allocation3 + $0x50] ss:$164 sps:$4 sm:$0xff]   ;;  %v6067_v9 = vld [vmem:[#allocation5 + $0x114] ss:$8 sps:$4 sm:$0xff]   ;;  %v6065_v11 = vld [vmem:[#allocation5 + $0x110] ss:$8 sps:$4 sm:$0xff]  }
  0x65   :  { %v6062_v8 = vld [vmem:[#allocation5 + $0xb00] ss:$8 sps:$4 sm:$0xff]   ;;  %v6070_v10 = vld [vmem:[#allocation5 + $0xb14] ss:$8 sps:$4 sm:$0xff]   ;;  %v6068_v12 = vld [vmem:[#allocation5 + $0xb10] ss:$8 sps:$4 sm:$0xff]  }
  0x66   :  { %4238 = vmatpush1.bf16.msra.mxu1 %v5997_v27  ;;  %v6076_v14 = vld [vmem:[#allocation5 + $0xb24] ss:$8 sps:$4 sm:$0xff]   ;;  %v6071_v15 = vld [vmem:[#allocation5 + $0x120] ss:$8 sps:$4 sm:$0xff]   ;;  %v6079_v17 = vld [vmem:[#allocation5 + $0x134] ss:$8 sps:$4 sm:$0xff]  }
  0x67   :  { %4668 = vmatpush1.bf16.msra.mxu0 %v5998_v28  ;;  %4239 = vmatprep.subr.bf16.mxu1 %v5999_v29  ;;  %v6074_v16 = vld [vmem:[#allocation5 + $0xb20] ss:$8 sps:$4 sm:$0xff]   ;;  %v6082_v18 = vld [vmem:[#allocation5 + $0xb34] ss:$8 sps:$4 sm:$0xff]   ;;  %v6077_v19 = vld [vmem:[#allocation5 + $0x130] ss:$8 sps:$4 sm:$0xff]  }
  0x68   :  { %4669 = vmatprep.subr.bf16.mxu0 %v6001_v30  ;;  %v6080_v20 = vld [vmem:[#allocation5 + $0xb30] ss:$8 sps:$4 sm:$0xff]   ;;  %v6085_v21 = vld [vmem:[#allocation5 + $0x144] ss:$8 sps:$4 sm:$0xff]   ;;  %v6083_v23 = vld [vmem:[#allocation5 + $0x140] ss:$8 sps:$4 sm:$0xff]  }
  0x69   :  { %v6088_v22 = vld [vmem:[#allocation5 + $0xb44] ss:$8 sps:$4 sm:$0xff]   ;;  %v6086_v24 = vld [vmem:[#allocation5 + $0xb40] ss:$8 sps:$4 sm:$0xff]   ;;  %v6091_v25 = vld [vmem:[#allocation5 + $0x154] ss:$8 sps:$4 sm:$0xff]  }
  0x6a   :  { %4240 = vmatpush1.bf16.msra.mxu1 %v6003_v31  ;;  %v6094_v26 = vld [vmem:[#allocation5 + $0xb54] ss:$8 sps:$4 sm:$0xff]   ;;  %v6089_v27 = vld [vmem:[#allocation5 + $0x150] ss:$8 sps:$4 sm:$0xff]   ;;  %v6097_v29 = vld [vmem:[#allocation5 + $0x164] ss:$8 sps:$4 sm:$0xff]  }
  0x6b   :  { %4670 = vmatpush1.bf16.msra.mxu0 %v6004_v32  ;;  %4241 = vmatprep.subr.bf16.mxu1 %v6005_v33  ;;  %v6092_v28 = vld [vmem:[#allocation5 + $0xb50] ss:$8 sps:$4 sm:$0xff]   ;;  %v6100_v30 = vld [vmem:[#allocation5 + $0xb64] ss:$8 sps:$4 sm:$0xff]   ;;  %v6095_v31 = vld [vmem:[#allocation5 + $0x160] ss:$8 sps:$4 sm:$0xff]  }
  0x6c   :  { %4671 = vmatprep.subr.bf16.mxu0 %v6007_v34  ;;  %v6098_v32 = vld [vmem:[#allocation5 + $0xb60] ss:$8 sps:$4 sm:$0xff]   ;;  %v6103_v33 = vld [vmem:[#allocation5 + $0x174] ss:$8 sps:$4 sm:$0xff]   ;;  %vm4221_vm0 = vcmask 523264   ;;  %vm5163_vm1 = vcmask 7168  }
  0x6d   :  { %v6106_v34 = vld [vmem:[#allocation5 + $0xb74] ss:$8 sps:$4 sm:$0xff]   ;;  %v6119_v49 = vld [vmem:[#allocation5 + $0x1a0] ss:$8 sps:$4 sm:$0xff]  }
  0x6e   :  { %4242 = vmatpush1.bf16.msra.mxu1 %v6009_v35  ;;  %v6157_v35 = vld [vmem:[#allocation3 + $0xc] ss:$164 sps:$4 sm:$0xff]   ;;  %v6130_v52 = vld [vmem:[#allocation5 + $0xbb4] ss:$8 sps:$4 sm:$0xff]  }
  0x6f   :  { %4672 = vmatpush1.bf16.msra.mxu0 %v6010_v36  ;;  %4243 = vmatprep.subr.bf16.mxu1 %v6011_v37  ;;  %v6101_v36 = vld [vmem:[#allocation5 + $0x170] ss:$8 sps:$4 sm:$0xff]  }
  0x70   :  { %4673 = vmatprep.subr.bf16.mxu0 %v6013_v38  ;;  %v6104_v37 = vld [vmem:[#allocation5 + $0xb70] ss:$8 sps:$4 sm:$0xff]  }
  0x71   :  { %v6163_v38 = vld [vmem:[#allocation3 + $0x5c] ss:$164 sps:$4 sm:$0xff]  }
  0x72   :  { %4244 = vmatpush1.bf16.msra.mxu1 %v6015_v39  ;;  %v6109_v39 = vld [vmem:[#allocation5 + $0x184] ss:$8 sps:$4 sm:$0xff]  }
  0x73   :  { %4674 = vmatpush1.bf16.msra.mxu0 %v6016_v40  ;;  %4245 = vmatprep.subr.bf16.mxu1 %v6017_v41  ;;  %v6112_v40 = vld [vmem:[#allocation5 + $0xb84] ss:$8 sps:$4 sm:$0xff]   ;;  %v6107_v41 = vld [vmem:[#allocation5 + $0x180] ss:$8 sps:$4 sm:$0xff]  }
  0x74   :  { %4675 = vmatprep.subr.bf16.mxu0 %v6019_v42  ;;  %v6110_v42 = vld [vmem:[#allocation5 + $0xb80] ss:$8 sps:$4 sm:$0xff]  }
  0x76   :  { %4246 = vmatpush1.bf16.msra.mxu1 %v6021_v43  ;;  %v6115_v43 = vld [vmem:[#allocation5 + $0x194] ss:$8 sps:$4 sm:$0xff]  }
  0x77   :  { %4676 = vmatpush1.bf16.msra.mxu0 %v6022_v44  ;;  %4247 = vmatprep.subr.bf16.mxu1 %v6023_v45  ;;  %v6118_v44 = vld [vmem:[#allocation5 + $0xb94] ss:$8 sps:$4 sm:$0xff]   ;;  %v6113_v45 = vld [vmem:[#allocation5 + $0x190] ss:$8 sps:$4 sm:$0xff]  }
  0x78   :  { %4677 = vmatprep.subr.bf16.mxu0 %v6025_v46  ;;  %v6116_v46 = vld [vmem:[#allocation5 + $0xb90] ss:$8 sps:$4 sm:$0xff]  }
  0x7a   :  { %4248 = vmatpush1.bf16.msra.mxu1 %v6027_v47  ;;  %v6121_v47 = vld [vmem:[#allocation5 + $0x1a4] ss:$8 sps:$4 sm:$0xff]  }
  0x7b   :  { %4678 = vmatpush1.bf16.msra.mxu0 %v6028_v48  ;;  %4249 = vmatprep.subr.bf16.mxu1 %v6029_v50  ;;  %v6124_v48 = vld [vmem:[#allocation5 + $0xba4] ss:$8 sps:$4 sm:$0xff]   ;;  %v6122_v50 = vld [vmem:[#allocation5 + $0xba0] ss:$8 sps:$4 sm:$0xff]  }
  0x7c   :  { %4679 = vmatprep.subr.bf16.mxu0 %v6031_v51  ;;  %v6127_v51 = vld [vmem:[#allocation5 + $0x1b4] ss:$8 sps:$4 sm:$0xff]  }
  0x7e   :  { %4250 = vmatpush1.bf16.msra.mxu1 %v6033_v53  ;;  %v6125_v53 = vld [vmem:[#allocation5 + $0x1b0] ss:$8 sps:$4 sm:$0xff]  }
  0x7f   :  { %4680 = vmatpush1.bf16.msra.mxu0 %v6034_v54  ;;  %4251 = vmatprep.subr.bf16.mxu1 %v6035_v55  ;;  %v6128_v54 = vld [vmem:[#allocation5 + $0xbb0] ss:$8 sps:$4 sm:$0xff]   ;;  %v6133_v55 = vld [vmem:[#allocation5 + $0x1c4] ss:$8 sps:$4 sm:$0xff]  }
  0x80   :  { %4681 = vmatprep.subr.bf16.mxu0 %v6037_v56  ;;  %v6136_v56 = vld [vmem:[#allocation5 + $0xbc4] ss:$8 sps:$4 sm:$0xff]  }
  0x82   :  { %4252 = vmatpush1.bf16.msra.mxu1 %v6039_v57  ;;  %v6131_v57 = vld [vmem:[#allocation5 + $0x1c0] ss:$8 sps:$4 sm:$0xff]  }
  0x83   :  { %4682 = vmatpush1.bf16.msra.mxu0 %v6040_v58  ;;  %4253 = vmatprep.subr.bf16.mxu1 %v6041_v59  ;;  %v6134_v58 = vld [vmem:[#allocation5 + $0xbc0] ss:$8 sps:$4 sm:$0xff]   ;;  %v6139_v59 = vld [vmem:[#allocation5 + $0x1d4] ss:$8 sps:$4 sm:$0xff]  }
  0x84   :  { %4683 = vmatprep.subr.bf16.mxu0 %v6043_v60  ;;  %v6142_v60 = vld [vmem:[#allocation5 + $0xbd4] ss:$8 sps:$4 sm:$0xff]  }
  0x86   :  { %4254 = vmatpush1.bf16.msra.mxu1 %v6045_v61  ;;  %v6137_v61 = vld [vmem:[#allocation5 + $0x1d0] ss:$8 sps:$4 sm:$0xff]  }
  0x87   :  { %4684 = vmatpush1.bf16.msra.mxu0 %v6046_v62  ;;  %4255 = vmatprep.subr.bf16.mxu1 %v6047_v63  ;;  %v6140_v62 = vld [vmem:[#allocation5 + $0xbd0] ss:$8 sps:$4 sm:$0xff]   ;;  %v6145_v63 = vld [vmem:[#allocation5 + $0x1e4] ss:$8 sps:$4 sm:$0xff]  }
  0x88   :  { %4685 = vmatprep.subr.bf16.mxu0 %v6049_v0  ;;  %v6148_v0 = vld [vmem:[#allocation5 + $0xbe4] ss:$8 sps:$4 sm:$0xff]  }
  0x8a   :  { %4256 = vmatpush1.bf16.msra.mxu1 %v6051_v1  ;;  %v6143_v1 = vld [vmem:[#allocation5 + $0x1e0] ss:$8 sps:$4 sm:$0xff]  }
  0x8b   :  { %4686 = vmatpush1.bf16.msra.mxu0 %v6052_v2  ;;  %4268 = vmatprep.subr.bf16.mxu1 %v6058_v3  ;;  %v6146_v2 = vld [vmem:[#allocation5 + $0xbe0] ss:$8 sps:$4 sm:$0xff]   ;;  %v6151_v3 = vld [vmem:[#allocation5 + $0x1f4] ss:$8 sps:$4 sm:$0xff]  }
  0x8c   :  { %4698 = vmatprep.subr.bf16.mxu0 %v6064_v4  ;;  %v6154_v4 = vld [vmem:[#allocation5 + $0xbf4] ss:$8 sps:$4 sm:$0xff]  }
  0x8d   :  { %4258 = vmatmul.mubr.bf16.vlgmr.msra.gmra.mrb[0].mxu1 %v6053_v5  ;;  %v6149_v5 = vld [vmem:[#allocation5 + $0x1f0] ss:$8 sps:$4 sm:$0xff]  }
  0x8e   :  { %4688 = vmatmul.mubr.bf16.vlgmr.msra.gmra.mrb[0].mxu0 %v6059_v7  ;;  %4269 = vmatpush1.bf16.msra.mxu1 %v6056_v6  ;;  %v6152_v6 = vld [vmem:[#allocation5 + $0xbf0] ss:$8 sps:$4 sm:$0xff]   ;;  %v6160_v7 = vld [vmem:[#allocation5 + $0x204] ss:$8 sps:$4 sm:$0xff]  }
  0x8f   :  { %4699 = vmatpush1.bf16.msra.mxu0 %v6062_v8  ;;  %4270 = vmatprep.subr.bf16.mxu1 %v6067_v9  ;;  %v6166_v8 = vld [vmem:[#allocation5 + $0xc04] ss:$8 sps:$4 sm:$0xff]  }
  0x90   :  { %4700 = vmatprep.subr.bf16.mxu0 %v6070_v10  ;;  %4300 = vmatprep.mubr.bf16.mxu1 %v6157_v35  ;;  %v6155_v9 = vld [vmem:[#allocation3 + $0x8] ss:$164 sps:$4 sm:$0xff]  }
  0x91   :  { %4730 = vmatprep.mubr.bf16.mxu0 %v6163_v38  ;;  %v6158_v10 = vld [vmem:[#allocation5 + $0x200] ss:$8 sps:$4 sm:$0xff]   ;;  %v6199_v35 = vld [vmem:[#allocation5 + $0x264] ss:$8 sps:$4 sm:$0xff]  }
  0x92   :  { %4271 = vmatpush1.bf16.msra.mxu1 %v6065_v11  ;;  %v6161_v11 = vld [vmem:[#allocation3 + $0x58] ss:$164 sps:$4 sm:$0xff]   ;;  %v6200_v38 = vld [vmem:[#allocation5 + $0xc60] ss:$8 sps:$4 sm:$0xff]  }
  0x93   :  { %4701 = vmatpush1.bf16.msra.mxu0 %v6068_v12  ;;  %4272 = vmatprep.subr.bf16.mxu1 %v6073_v13  ;;  %v6164_v12 = vld [vmem:[#allocation5 + $0xc00] ss:$8 sps:$4 sm:$0xff]   ;;  %v6169_v13 = vld [vmem:[#allocation5 + $0x214] ss:$8 sps:$4 sm:$0xff]  }
  0x94   :  { %4702 = vmatprep.subr.bf16.mxu0 %v6076_v14  ;;  %v6172_v14 = vld [vmem:[#allocation5 + $0xc14] ss:$8 sps:$4 sm:$0xff]  }
  0x96   :  { %4273 = vmatpush1.bf16.msra.mxu1 %v6071_v15  ;;  %v6167_v15 = vld [vmem:[#allocation5 + $0x210] ss:$8 sps:$4 sm:$0xff]  }
  0x97   :  { %4703 = vmatpush1.bf16.msra.mxu0 %v6074_v16  ;;  %4274 = vmatprep.subr.bf16.mxu1 %v6079_v17  ;;  %v6170_v16 = vld [vmem:[#allocation5 + $0xc10] ss:$8 sps:$4 sm:$0xff]   ;;  %v6175_v17 = vld [vmem:[#allocation5 + $0x224] ss:$8 sps:$4 sm:$0xff]  }
  0x98   :  { %4704 = vmatprep.subr.bf16.mxu0 %v6082_v18  ;;  %v6178_v18 = vld [vmem:[#allocation5 + $0xc24] ss:$8 sps:$4 sm:$0xff]  }
  0x9a   :  { %4275 = vmatpush1.bf16.msra.mxu1 %v6077_v19  ;;  %v6173_v19 = vld [vmem:[#allocation5 + $0x220] ss:$8 sps:$4 sm:$0xff]  }
  0x9b   :  { %4705 = vmatpush1.bf16.msra.mxu0 %v6080_v20  ;;  %4276 = vmatprep.subr.bf16.mxu1 %v6085_v21  ;;  %v6259_v20 = vld [vmem:[#allocation3 + $0x14] ss:$164 sps:$4 sm:$0xff]   ;;  %v6176_v21 = vld [vmem:[#allocation5 + $0xc20] ss:$8 sps:$4 sm:$0xff]  }
  0x9c   :  { %4706 = vmatprep.subr.bf16.mxu0 %v6088_v22  ;;  %v6181_v22 = vld [vmem:[#allocation5 + $0x234] ss:$8 sps:$4 sm:$0xff]  }
  0x9e   :  { %4277 = vmatpush1.bf16.msra.mxu1 %v6083_v23  ;;  %v6184_v23 = vld [vmem:[#allocation5 + $0xc34] ss:$8 sps:$4 sm:$0xff]  }
  0x9f   :  { %4707 = vmatpush1.bf16.msra.mxu0 %v6086_v24  ;;  %4278 = vmatprep.subr.bf16.mxu1 %v6091_v25  ;;  %v6265_v24 = vld [vmem:[#allocation3 + $0x64] ss:$164 sps:$4 sm:$0xff]   ;;  %v6179_v25 = vld [vmem:[#allocation5 + $0x230] ss:$8 sps:$4 sm:$0xff]  }
  0xa0   :  { %4708 = vmatprep.subr.bf16.mxu0 %v6094_v26  ;;  %v6182_v26 = vld [vmem:[#allocation5 + $0xc30] ss:$8 sps:$4 sm:$0xff]  }
  0xa2   :  { %4279 = vmatpush1.bf16.msra.mxu1 %v6089_v27  ;;  %v6187_v27 = vld [vmem:[#allocation5 + $0x244] ss:$8 sps:$4 sm:$0xff]  }
  0xa3   :  { %4709 = vmatpush1.bf16.msra.mxu0 %v6092_v28  ;;  %4280 = vmatprep.subr.bf16.mxu1 %v6097_v29  ;;  %v6190_v28 = vld [vmem:[#allocation5 + $0xc44] ss:$8 sps:$4 sm:$0xff]   ;;  %v6185_v29 = vld [vmem:[#allocation5 + $0x240] ss:$8 sps:$4 sm:$0xff]  }
  0xa4   :  { %4710 = vmatprep.subr.bf16.mxu0 %v6100_v30  ;;  %v6188_v30 = vld [vmem:[#allocation5 + $0xc40] ss:$8 sps:$4 sm:$0xff]  }
  0xa6   :  { %4281 = vmatpush1.bf16.msra.mxu1 %v6095_v31  ;;  %v6193_v31 = vld [vmem:[#allocation5 + $0x254] ss:$8 sps:$4 sm:$0xff]  }
  0xa7   :  { %4711 = vmatpush1.bf16.msra.mxu0 %v6098_v32  ;;  %4282 = vmatprep.subr.bf16.mxu1 %v6103_v33  ;;  %v6196_v32 = vld [vmem:[#allocation5 + $0xc54] ss:$8 sps:$4 sm:$0xff]   ;;  %v6191_v33 = vld [vmem:[#allocation5 + $0x250] ss:$8 sps:$4 sm:$0xff]  }
  0xa8   :  { %4712 = vmatprep.subr.bf16.mxu0 %v6106_v34  ;;  %v6194_v34 = vld [vmem:[#allocation5 + $0xc50] ss:$8 sps:$4 sm:$0xff]  }
  0xaa   :  { %4283 = vmatpush1.bf16.msra.mxu1 %v6101_v36  ;;  %v6202_v36 = vld [vmem:[#allocation5 + $0xc64] ss:$8 sps:$4 sm:$0xff]  }
  0xab   :  { %4713 = vmatpush1.bf16.msra.mxu0 %v6104_v37  ;;  %4284 = vmatprep.subr.bf16.mxu1 %v6109_v39  ;;  %v6197_v37 = vld [vmem:[#allocation5 + $0x260] ss:$8 sps:$4 sm:$0xff]   ;;  %v6205_v39 = vld [vmem:[#allocation5 + $0x274] ss:$8 sps:$4 sm:$0xff]  }
  0xac   :  { %4714 = vmatprep.subr.bf16.mxu0 %v6112_v40  ;;  %v6208_v40 = vld [vmem:[#allocation5 + $0xc74] ss:$8 sps:$4 sm:$0xff]  }
  0xae   :  { %4285 = vmatpush1.bf16.msra.mxu1 %v6107_v41  ;;  %v6203_v41 = vld [vmem:[#allocation5 + $0x270] ss:$8 sps:$4 sm:$0xff]  }
  0xaf   :  { %4715 = vmatpush1.bf16.msra.mxu0 %v6110_v42  ;;  %4286 = vmatprep.subr.bf16.mxu1 %v6115_v43  ;;  %v6206_v42 = vld [vmem:[#allocation5 + $0xc70] ss:$8 sps:$4 sm:$0xff]   ;;  %v6211_v43 = vld [vmem:[#allocation5 + $0x284] ss:$8 sps:$4 sm:$0xff]  }
  0xb0   :  { %4716 = vmatprep.subr.bf16.mxu0 %v6118_v44  ;;  %v6214_v44 = vld [vmem:[#allocation5 + $0xc84] ss:$8 sps:$4 sm:$0xff]  }
  0xb2   :  { %4287 = vmatpush1.bf16.msra.mxu1 %v6113_v45  ;;  %v6209_v45 = vld [vmem:[#allocation5 + $0x280] ss:$8 sps:$4 sm:$0xff]  }
  0xb3   :  { %4717 = vmatpush1.bf16.msra.mxu0 %v6116_v46  ;;  %4288 = vmatprep.subr.bf16.mxu1 %v6121_v47  ;;  %v6212_v46 = vld [vmem:[#allocation5 + $0xc80] ss:$8 sps:$4 sm:$0xff]   ;;  %v6217_v47 = vld [vmem:[#allocation5 + $0x294] ss:$8 sps:$4 sm:$0xff]  }
  0xb4   :  { %4718 = vmatprep.subr.bf16.mxu0 %v6124_v48  ;;  %v6220_v48 = vld [vmem:[#allocation5 + $0xc94] ss:$8 sps:$4 sm:$0xff]  }
  0xb6   :  { %4289 = vmatpush1.bf16.msra.mxu1 %v6119_v49  ;;  %v6215_v49 = vld [vmem:[#allocation5 + $0x290] ss:$8 sps:$4 sm:$0xff]  }
  0xb7   :  { %4719 = vmatpush1.bf16.msra.mxu0 %v6122_v50  ;;  %4290 = vmatprep.subr.bf16.mxu1 %v6127_v51  ;;  %v6218_v50 = vld [vmem:[#allocation5 + $0xc90] ss:$8 sps:$4 sm:$0xff]   ;;  %v6223_v51 = vld [vmem:[#allocation5 + $0x2a4] ss:$8 sps:$4 sm:$0xff]  }
  0xb8   :  { %4720 = vmatprep.subr.bf16.mxu0 %v6130_v52  ;;  %v6226_v52 = vld [vmem:[#allocation5 + $0xca4] ss:$8 sps:$4 sm:$0xff]  }
  0xba   :  { %4291 = vmatpush1.bf16.msra.mxu1 %v6125_v53  ;;  %v6221_v53 = vld [vmem:[#allocation5 + $0x2a0] ss:$8 sps:$4 sm:$0xff]  }
  0xbb   :  { %4721 = vmatpush1.bf16.msra.mxu0 %v6128_v54  ;;  %4292 = vmatprep.subr.bf16.mxu1 %v6133_v55  ;;  %v6224_v54 = vld [vmem:[#allocation5 + $0xca0] ss:$8 sps:$4 sm:$0xff]   ;;  %v6229_v55 = vld [vmem:[#allocation5 + $0x2b4] ss:$8 sps:$4 sm:$0xff]  }
  0xbc   :  { %4722 = vmatprep.subr.bf16.mxu0 %v6136_v56  ;;  %v6232_v56 = vld [vmem:[#allocation5 + $0xcb4] ss:$8 sps:$4 sm:$0xff]  }
  0xbe   :  { %4293 = vmatpush1.bf16.msra.mxu1 %v6131_v57  ;;  %v6227_v57 = vld [vmem:[#allocation5 + $0x2b0] ss:$8 sps:$4 sm:$0xff]  }
  0xbf   :  { %4723 = vmatpush1.bf16.msra.mxu0 %v6134_v58  ;;  %4294 = vmatprep.subr.bf16.mxu1 %v6139_v59  ;;  %v6230_v58 = vld [vmem:[#allocation5 + $0xcb0] ss:$8 sps:$4 sm:$0xff]   ;;  %v6235_v59 = vld [vmem:[#allocation5 + $0x2c4] ss:$8 sps:$4 sm:$0xff]  }
  0xc0   :  { %4724 = vmatprep.subr.bf16.mxu0 %v6142_v60  ;;  %v6238_v60 = vld [vmem:[#allocation5 + $0xcc4] ss:$8 sps:$4 sm:$0xff]  }
  0xc2   :  { %4295 = vmatpush1.bf16.msra.mxu1 %v6137_v61  ;;  %v6233_v61 = vld [vmem:[#allocation5 + $0x2c0] ss:$8 sps:$4 sm:$0xff]  }
  0xc3   :  { %4725 = vmatpush1.bf16.msra.mxu0 %v6140_v62  ;;  %4296 = vmatprep.subr.bf16.mxu1 %v6145_v63  ;;  %v6236_v62 = vld [vmem:[#allocation5 + $0xcc0] ss:$8 sps:$4 sm:$0xff]   ;;  %v6241_v63 = vld [vmem:[#allocation5 + $0x2d4] ss:$8 sps:$4 sm:$0xff]  }
  0xc4   :  { %4726 = vmatprep.subr.bf16.mxu0 %v6148_v0  ;;  %v6244_v0 = vld [vmem:[#allocation5 + $0xcd4] ss:$8 sps:$4 sm:$0xff]  }
  0xc6   :  { %4297 = vmatpush1.bf16.msra.mxu1 %v6143_v1  ;;  %v6239_v1 = vld [vmem:[#allocation5 + $0x2d0] ss:$8 sps:$4 sm:$0xff]  }
  0xc7   :  { %4727 = vmatpush1.bf16.msra.mxu0 %v6146_v2  ;;  %4298 = vmatprep.subr.bf16.mxu1 %v6151_v3  ;;  %v6242_v2 = vld [vmem:[#allocation5 + $0xcd0] ss:$8 sps:$4 sm:$0xff]   ;;  %v6247_v3 = vld [vmem:[#allocation5 + $0x2e4] ss:$8 sps:$4 sm:$0xff]  }
  0xc8   :  { %4728 = vmatprep.subr.bf16.mxu0 %v6154_v4  ;;  %v6250_v4 = vld [vmem:[#allocation5 + $0xce4] ss:$8 sps:$4 sm:$0xff]  }
  0xca   :  { %4299 = vmatpush1.bf16.msra.mxu1 %v6149_v5  ;;  %v6245_v5 = vld [vmem:[#allocation5 + $0x2e0] ss:$8 sps:$4 sm:$0xff]  }
  0xcb   :  { %4729 = vmatpush1.bf16.msra.mxu0 %v6152_v6  ;;  %4311 = vmatprep.subr.bf16.mxu1 %v6160_v7  ;;  %v6248_v6 = vld [vmem:[#allocation5 + $0xce0] ss:$8 sps:$4 sm:$0xff]   ;;  %v6253_v7 = vld [vmem:[#allocation5 + $0x2f4] ss:$8 sps:$4 sm:$0xff]  }
  0xcc   :  { %4741 = vmatprep.subr.bf16.mxu0 %v6166_v8  ;;  %v6256_v8 = vld [vmem:[#allocation5 + $0xcf4] ss:$8 sps:$4 sm:$0xff]  }
  0xcd   :  { %4301 = vmatmul.mubr.bf16.vlgmr.msra.gmra.mrb[0].mxu1 %v6155_v9  ;;  %v6251_v9 = vld [vmem:[#allocation5 + $0x2f0] ss:$8 sps:$4 sm:$0xff]  }
  0xce   :  { %4731 = vmatmul.mubr.bf16.vlgmr.msra.gmra.mrb[0].mxu0 %v6161_v11  ;;  %4312 = vmatpush1.bf16.msra.mxu1 %v6158_v10  ;;  %v6254_v10 = vld [vmem:[#allocation5 + $0xcf0] ss:$8 sps:$4 sm:$0xff]   ;;  %v6262_v11 = vld [vmem:[#allocation5 + $0x304] ss:$8 sps:$4 sm:$0xff]  }
  0xcf   :  { %4742 = vmatpush1.bf16.msra.mxu0 %v6164_v12  ;;  %4313 = vmatprep.subr.bf16.mxu1 %v6169_v13  ;;  %v6268_v12 = vld [vmem:[#allocation5 + $0xd04] ss:$8 sps:$4 sm:$0xff]  }
  0xd0   :  { %4743 = vmatprep.subr.bf16.mxu0 %v6172_v14  ;;  %4343 = vmatprep.mubr.bf16.mxu1 %v6259_v20  ;;  %v6257_v13 = vld [vmem:[#allocation3 + $0x10] ss:$164 sps:$4 sm:$0xff]  }
  0xd1   :  { %4773 = vmatprep.mubr.bf16.mxu0 %v6265_v24  ;;  %v6260_v14 = vld [vmem:[#allocation5 + $0x300] ss:$8 sps:$4 sm:$0xff]   ;;  %v6280_v24 = vld [vmem:[#allocation5 + $0xd24] ss:$8 sps:$4 sm:$0xff]  }
  0xd2   :  { %4314 = vmatpush1.bf16.msra.mxu1 %v6167_v15  ;;  %v6263_v15 = vld [vmem:[#allocation3 + $0x60] ss:$164 sps:$4 sm:$0xff]   ;;  %v6367_v20 = vld [vmem:[#allocation3 + $0x6c] ss:$164 sps:$4 sm:$0xff]  }
  0xd3   :  { %4744 = vmatpush1.bf16.msra.mxu0 %v6170_v16  ;;  %4315 = vmatprep.subr.bf16.mxu1 %v6175_v17  ;;  %v6266_v16 = vld [vmem:[#allocation5 + $0xd00] ss:$8 sps:$4 sm:$0xff]   ;;  %v6271_v17 = vld [vmem:[#allocation5 + $0x314] ss:$8 sps:$4 sm:$0xff]  }
  0xd4   :  { %4745 = vmatprep.subr.bf16.mxu0 %v6178_v18  ;;  %v6274_v18 = vld [vmem:[#allocation5 + $0xd14] ss:$8 sps:$4 sm:$0xff]  }
  0xd6   :  { %4316 = vmatpush1.bf16.msra.mxu1 %v6173_v19  ;;  %v6361_v19 = vld [vmem:[#allocation3 + $0x1c] ss:$164 sps:$4 sm:$0xff]  }
  0xd7   :  { %4746 = vmatpush1.bf16.msra.mxu0 %v6176_v21  ;;  %4317 = vmatprep.subr.bf16.mxu1 %v6181_v22  ;;  %v6269_v21 = vld [vmem:[#allocation5 + $0x310] ss:$8 sps:$4 sm:$0xff]  }
  0xd8   :  { %4747 = vmatprep.subr.bf16.mxu0 %v6184_v23  ;;  %v6272_v22 = vld [vmem:[#allocation5 + $0xd10] ss:$8 sps:$4 sm:$0xff]   ;;  %v6277_v23 = vld [vmem:[#allocation5 + $0x324] ss:$8 sps:$4 sm:$0xff]  }
  0xda   :  { %4318 = vmatpush1.bf16.msra.mxu1 %v6179_v25  ;;  %v6275_v25 = vld [vmem:[#allocation5 + $0x320] ss:$8 sps:$4 sm:$0xff]  }
  0xdb   :  { %4748 = vmatpush1.bf16.msra.mxu0 %v6182_v26  ;;  %4319 = vmatprep.subr.bf16.mxu1 %v6187_v27  ;;  %v6278_v26 = vld [vmem:[#allocation5 + $0xd20] ss:$8 sps:$4 sm:$0xff]   ;;  %v6283_v27 = vld [vmem:[#allocation5 + $0x334] ss:$8 sps:$4 sm:$0xff]  }
  0xdc   :  { %4749 = vmatprep.subr.bf16.mxu0 %v6190_v28  ;;  %v6286_v28 = vld [vmem:[#allocation5 + $0xd34] ss:$8 sps:$4 sm:$0xff]  }
  0xde   :  { %4320 = vmatpush1.bf16.msra.mxu1 %v6185_v29  ;;  %v6281_v29 = vld [vmem:[#allocation5 + $0x330] ss:$8 sps:$4 sm:$0xff]  }
  0xdf   :  { %4750 = vmatpush1.bf16.msra.mxu0 %v6188_v30  ;;  %4321 = vmatprep.subr.bf16.mxu1 %v6193_v31  ;;  %v6284_v30 = vld [vmem:[#allocation5 + $0xd30] ss:$8 sps:$4 sm:$0xff]   ;;  %v6289_v31 = vld [vmem:[#allocation5 + $0x344] ss:$8 sps:$4 sm:$0xff]  }
  0xe0   :  { %4751 = vmatprep.subr.bf16.mxu0 %v6196_v32  ;;  %v6292_v32 = vld [vmem:[#allocation5 + $0xd44] ss:$8 sps:$4 sm:$0xff]  }
  0xe2   :  { %4322 = vmatpush1.bf16.msra.mxu1 %v6191_v33  ;;  %v6287_v33 = vld [vmem:[#allocation5 + $0x340] ss:$8 sps:$4 sm:$0xff]  }
  0xe3   :  { %4752 = vmatpush1.bf16.msra.mxu0 %v6194_v34  ;;  %4323 = vmatprep.subr.bf16.mxu1 %v6199_v35  ;;  %v6290_v34 = vld [vmem:[#allocation5 + $0xd40] ss:$8 sps:$4 sm:$0xff]   ;;  %v6295_v35 = vld [vmem:[#allocation5 + $0x354] ss:$8 sps:$4 sm:$0xff]  }
  0xe4   :  { %4753 = vmatprep.subr.bf16.mxu0 %v6202_v36  ;;  %v6298_v36 = vld [vmem:[#allocation5 + $0xd54] ss:$8 sps:$4 sm:$0xff]  }
  0xe6   :  { %4324 = vmatpush1.bf16.msra.mxu1 %v6197_v37  ;;  %v6293_v37 = vld [vmem:[#allocation5 + $0x350] ss:$8 sps:$4 sm:$0xff]  }
  0xe7   :  { %4754 = vmatpush1.bf16.msra.mxu0 %v6200_v38  ;;  %4325 = vmatprep.subr.bf16.mxu1 %v6205_v39  ;;  %v6296_v38 = vld [vmem:[#allocation5 + $0xd50] ss:$8 sps:$4 sm:$0xff]   ;;  %v6301_v39 = vld [vmem:[#allocation5 + $0x364] ss:$8 sps:$4 sm:$0xff]  }
  0xe8   :  { %4755 = vmatprep.subr.bf16.mxu0 %v6208_v40  ;;  %v6304_v40 = vld [vmem:[#allocation5 + $0xd64] ss:$8 sps:$4 sm:$0xff]  }
  0xea   :  { %4326 = vmatpush1.bf16.msra.mxu1 %v6203_v41  ;;  %v6299_v41 = vld [vmem:[#allocation5 + $0x360] ss:$8 sps:$4 sm:$0xff]  }
  0xeb   :  { %4756 = vmatpush1.bf16.msra.mxu0 %v6206_v42  ;;  %4327 = vmatprep.subr.bf16.mxu1 %v6211_v43  ;;  %v6302_v42 = vld [vmem:[#allocation5 + $0xd60] ss:$8 sps:$4 sm:$0xff]   ;;  %v6307_v43 = vld [vmem:[#allocation5 + $0x374] ss:$8 sps:$4 sm:$0xff]  }
  0xec   :  { %4757 = vmatprep.subr.bf16.mxu0 %v6214_v44  ;;  %v6310_v44 = vld [vmem:[#allocation5 + $0xd74] ss:$8 sps:$4 sm:$0xff]  }
  0xee   :  { %4328 = vmatpush1.bf16.msra.mxu1 %v6209_v45  ;;  %v6305_v45 = vld [vmem:[#allocation5 + $0x370] ss:$8 sps:$4 sm:$0xff]  }
  0xef   :  { %4758 = vmatpush1.bf16.msra.mxu0 %v6212_v46  ;;  %4329 = vmatprep.subr.bf16.mxu1 %v6217_v47  ;;  %v6308_v46 = vld [vmem:[#allocation5 + $0xd70] ss:$8 sps:$4 sm:$0xff]   ;;  %v6313_v47 = vld [vmem:[#allocation5 + $0x384] ss:$8 sps:$4 sm:$0xff]  }
  0xf0   :  { %4759 = vmatprep.subr.bf16.mxu0 %v6220_v48  ;;  %v6316_v48 = vld [vmem:[#allocation5 + $0xd84] ss:$8 sps:$4 sm:$0xff]  }
  0xf2   :  { %4330 = vmatpush1.bf16.msra.mxu1 %v6215_v49  ;;  %v6311_v49 = vld [vmem:[#allocation5 + $0x380] ss:$8 sps:$4 sm:$0xff]  }
  0xf3   :  { %4760 = vmatpush1.bf16.msra.mxu0 %v6218_v50  ;;  %4331 = vmatprep.subr.bf16.mxu1 %v6223_v51  ;;  %v6314_v50 = vld [vmem:[#allocation5 + $0xd80] ss:$8 sps:$4 sm:$0xff]   ;;  %v6319_v51 = vld [vmem:[#allocation5 + $0x394] ss:$8 sps:$4 sm:$0xff]  }
  0xf4   :  { %4761 = vmatprep.subr.bf16.mxu0 %v6226_v52  ;;  %v6322_v52 = vld [vmem:[#allocation5 + $0xd94] ss:$8 sps:$4 sm:$0xff]  }
  0xf6   :  { %4332 = vmatpush1.bf16.msra.mxu1 %v6221_v53  ;;  %v6317_v53 = vld [vmem:[#allocation5 + $0x390] ss:$8 sps:$4 sm:$0xff]  }
  0xf7   :  { %4762 = vmatpush1.bf16.msra.mxu0 %v6224_v54  ;;  %4333 = vmatprep.subr.bf16.mxu1 %v6229_v55  ;;  %v6320_v54 = vld [vmem:[#allocation5 + $0xd90] ss:$8 sps:$4 sm:$0xff]   ;;  %v6325_v55 = vld [vmem:[#allocation5 + $0x3a4] ss:$8 sps:$4 sm:$0xff]  }
  0xf8   :  { %4763 = vmatprep.subr.bf16.mxu0 %v6232_v56  ;;  %v6328_v56 = vld [vmem:[#allocation5 + $0xda4] ss:$8 sps:$4 sm:$0xff]  }
  0xfa   :  { %4334 = vmatpush1.bf16.msra.mxu1 %v6227_v57  ;;  %v6323_v57 = vld [vmem:[#allocation5 + $0x3a0] ss:$8 sps:$4 sm:$0xff]  }
  0xfb   :  { %4764 = vmatpush1.bf16.msra.mxu0 %v6230_v58  ;;  %4335 = vmatprep.subr.bf16.mxu1 %v6235_v59  ;;  %v6326_v58 = vld [vmem:[#allocation5 + $0xda0] ss:$8 sps:$4 sm:$0xff]   ;;  %v6331_v59 = vld [vmem:[#allocation5 + $0x3b4] ss:$8 sps:$4 sm:$0xff]  }
  0xfc   :  { %4765 = vmatprep.subr.bf16.mxu0 %v6238_v60  ;;  %v6334_v60 = vld [vmem:[#allocation5 + $0xdb4] ss:$8 sps:$4 sm:$0xff]  }
  0xfe   :  { %4336 = vmatpush1.bf16.msra.mxu1 %v6233_v61  ;;  %v6329_v61 = vld [vmem:[#allocation5 + $0x3b0] ss:$8 sps:$4 sm:$0xff]  }
  0xff   :  { %4766 = vmatpush1.bf16.msra.mxu0 %v6236_v62  ;;  %4337 = vmatprep.subr.bf16.mxu1 %v6241_v63  ;;  %v6332_v62 = vld [vmem:[#allocation5 + $0xdb0] ss:$8 sps:$4 sm:$0xff]   ;;  %v6337_v63 = vld [vmem:[#allocation5 + $0x3c4] ss:$8 sps:$4 sm:$0xff]  }
 0x100   :  { %4767 = vmatprep.subr.bf16.mxu0 %v6244_v0  ;;  %v6340_v0 = vld [vmem:[#allocation5 + $0xdc4] ss:$8 sps:$4 sm:$0xff]  }
 0x102   :  { %4338 = vmatpush1.bf16.msra.mxu1 %v6239_v1  ;;  %v6335_v1 = vld [vmem:[#allocation5 + $0x3c0] ss:$8 sps:$4 sm:$0xff]  }
 0x103   :  { %4768 = vmatpush1.bf16.msra.mxu0 %v6242_v2  ;;  %4339 = vmatprep.subr.bf16.mxu1 %v6247_v3  ;;  %v6338_v2 = vld [vmem:[#allocation5 + $0xdc0] ss:$8 sps:$4 sm:$0xff]   ;;  %v6343_v3 = vld [vmem:[#allocation5 + $0x3d4] ss:$8 sps:$4 sm:$0xff]  }
 0x104   :  { %4769 = vmatprep.subr.bf16.mxu0 %v6250_v4  ;;  %v6346_v4 = vld [vmem:[#allocation5 + $0xdd4] ss:$8 sps:$4 sm:$0xff]  }
 0x106   :  { %4340 = vmatpush1.bf16.msra.mxu1 %v6245_v5  ;;  %v6341_v5 = vld [vmem:[#allocation5 + $0x3d0] ss:$8 sps:$4 sm:$0xff]  }
 0x107   :  { %4770 = vmatpush1.bf16.msra.mxu0 %v6248_v6  ;;  %4341 = vmatprep.subr.bf16.mxu1 %v6253_v7  ;;  %v6344_v6 = vld [vmem:[#allocation5 + $0xdd0] ss:$8 sps:$4 sm:$0xff]   ;;  %v6349_v7 = vld [vmem:[#allocation5 + $0x3e4] ss:$8 sps:$4 sm:$0xff]  }
 0x108   :  { %4771 = vmatprep.subr.bf16.mxu0 %v6256_v8  ;;  %v6352_v8 = vld [vmem:[#allocation5 + $0xde4] ss:$8 sps:$4 sm:$0xff]  }
 0x10a   :  { %4342 = vmatpush1.bf16.msra.mxu1 %v6251_v9  ;;  %v6347_v9 = vld [vmem:[#allocation5 + $0x3e0] ss:$8 sps:$4 sm:$0xff]  }
 0x10b   :  { %4772 = vmatpush1.bf16.msra.mxu0 %v6254_v10  ;;  %4354 = vmatprep.subr.bf16.mxu1 %v6262_v11  ;;  %v6350_v10 = vld [vmem:[#allocation5 + $0xde0] ss:$8 sps:$4 sm:$0xff]   ;;  %v6355_v11 = vld [vmem:[#allocation5 + $0x3f4] ss:$8 sps:$4 sm:$0xff]  }
 0x10c   :  { %4784 = vmatprep.subr.bf16.mxu0 %v6268_v12  ;;  %v6358_v12 = vld [vmem:[#allocation5 + $0xdf4] ss:$8 sps:$4 sm:$0xff]  }
 0x10d   :  { %4344 = vmatmul.mubr.bf16.vlgmr.msra.gmra.mrb[0].mxu1 %v6257_v13  ;;  %v6353_v13 = vld [vmem:[#allocation5 + $0x3f0] ss:$8 sps:$4 sm:$0xff]  }
 0x10e   :  { %4774 = vmatmul.mubr.bf16.vlgmr.msra.gmra.mrb[0].mxu0 %v6263_v15  ;;  %4355 = vmatpush1.bf16.msra.mxu1 %v6260_v14  ;;  %v6356_v14 = vld [vmem:[#allocation5 + $0xdf0] ss:$8 sps:$4 sm:$0xff]   ;;  %v6364_v15 = vld [vmem:[#allocation5 + $0x404] ss:$8 sps:$4 sm:$0xff]  }
 0x10f   :  { %4785 = vmatpush1.bf16.msra.mxu0 %v6266_v16  ;;  %4356 = vmatprep.subr.bf16.mxu1 %v6271_v17  ;;  %v6370_v16 = vld [vmem:[#allocation5 + $0xe04] ss:$8 sps:$4 sm:$0xff]   ;;  %v6359_v17 = vld [vmem:[#allocation3 + $0x18] ss:$164 sps:$4 sm:$0xff]  }
 0x110   :  { %4786 = vmatprep.subr.bf16.mxu0 %v6274_v18  ;;  %4386 = vmatprep.mubr.bf16.mxu1 %v6361_v19  ;;  %v6362_v18 = vld [vmem:[#allocation5 + $0x400] ss:$8 sps:$4 sm:$0xff]  }
 0x111   :  { %4816 = vmatprep.mubr.bf16.mxu0 %v6367_v20  ;;  %v6365_v19 = vld [vmem:[#allocation3 + $0x68] ss:$164 sps:$4 sm:$0xff]  }
 0x112   :  { %4357 = vmatpush1.bf16.msra.mxu1 %v6269_v21  ;;  %v6368_v20 = vld [vmem:[#allocation5 + $0xe00] ss:$8 sps:$4 sm:$0xff]   ;;  %v6373_v21 = vld [vmem:[#allocation5 + $0x414] ss:$8 sps:$4 sm:$0xff]  }
 0x113   :  { %4787 = vmatpush1.bf16.msra.mxu0 %v6272_v22  ;;  %4358 = vmatprep.subr.bf16.mxu1 %v6277_v23  ;;  %v6376_v22 = vld [vmem:[#allocation5 + $0xe14] ss:$8 sps:$4 sm:$0xff]  }
 0x114   :  { %4788 = vmatprep.subr.bf16.mxu0 %v6280_v24  ;;  %v6463_v23 = vld [vmem:[#allocation3 + $0x24] ss:$164 sps:$4 sm:$0xff]   ;;  %v6469_v24 = vld [vmem:[#allocation3 + $0x74] ss:$164 sps:$4 sm:$0xff]  }
 0x116   :  { %4359 = vmatpush1.bf16.msra.mxu1 %v6275_v25  ;;  %v6371_v25 = vld [vmem:[#allocation5 + $0x410] ss:$8 sps:$4 sm:$0xff]  }
 0x117   :  { %4789 = vmatpush1.bf16.msra.mxu0 %v6278_v26  ;;  %4360 = vmatprep.subr.bf16.mxu1 %v6283_v27  ;;  %v6374_v26 = vld [vmem:[#allocation5 + $0xe10] ss:$8 sps:$4 sm:$0xff]   ;;  %v6379_v27 = vld [vmem:[#allocation5 + $0x424] ss:$8 sps:$4 sm:$0xff]  }
 0x118   :  { %4790 = vmatprep.subr.bf16.mxu0 %v6286_v28  ;;  %v6382_v28 = vld [vmem:[#allocation5 + $0xe24] ss:$8 sps:$4 sm:$0xff]  }
 0x11a   :  { %4361 = vmatpush1.bf16.msra.mxu1 %v6281_v29  ;;  %v6377_v29 = vld [vmem:[#allocation5 + $0x420] ss:$8 sps:$4 sm:$0xff]  }
 0x11b   :  { %4791 = vmatpush1.bf16.msra.mxu0 %v6284_v30  ;;  %4362 = vmatprep.subr.bf16.mxu1 %v6289_v31  ;;  %v6380_v30 = vld [vmem:[#allocation5 + $0xe20] ss:$8 sps:$4 sm:$0xff]   ;;  %v6385_v31 = vld [vmem:[#allocation5 + $0x434] ss:$8 sps:$4 sm:$0xff]  }
 0x11c   :  { %4792 = vmatprep.subr.bf16.mxu0 %v6292_v32  ;;  %v6388_v32 = vld [vmem:[#allocation5 + $0xe34] ss:$8 sps:$4 sm:$0xff]  }
 0x11e   :  { %4363 = vmatpush1.bf16.msra.mxu1 %v6287_v33  ;;  %v6383_v33 = vld [vmem:[#allocation5 + $0x430] ss:$8 sps:$4 sm:$0xff]  }
 0x11f   :  { %4793 = vmatpush1.bf16.msra.mxu0 %v6290_v34  ;;  %4364 = vmatprep.subr.bf16.mxu1 %v6295_v35  ;;  %v6386_v34 = vld [vmem:[#allocation5 + $0xe30] ss:$8 sps:$4 sm:$0xff]   ;;  %v6391_v35 = vld [vmem:[#allocation5 + $0x444] ss:$8 sps:$4 sm:$0xff]  }
 0x120   :  { %4794 = vmatprep.subr.bf16.mxu0 %v6298_v36  ;;  %v6394_v36 = vld [vmem:[#allocation5 + $0xe44] ss:$8 sps:$4 sm:$0xff]  }
 0x122   :  { %4365 = vmatpush1.bf16.msra.mxu1 %v6293_v37  ;;  %v6389_v37 = vld [vmem:[#allocation5 + $0x440] ss:$8 sps:$4 sm:$0xff]  }
 0x123   :  { %4795 = vmatpush1.bf16.msra.mxu0 %v6296_v38  ;;  %4366 = vmatprep.subr.bf16.mxu1 %v6301_v39  ;;  %v6392_v38 = vld [vmem:[#allocation5 + $0xe40] ss:$8 sps:$4 sm:$0xff]   ;;  %v6397_v39 = vld [vmem:[#allocation5 + $0x454] ss:$8 sps:$4 sm:$0xff]  }
 0x124   :  { %4796 = vmatprep.subr.bf16.mxu0 %v6304_v40  ;;  %v6400_v40 = vld [vmem:[#allocation5 + $0xe54] ss:$8 sps:$4 sm:$0xff]  }
 0x126   :  { %4367 = vmatpush1.bf16.msra.mxu1 %v6299_v41  ;;  %v6395_v41 = vld [vmem:[#allocation5 + $0x450] ss:$8 sps:$4 sm:$0xff]  }
 0x127   :  { %4797 = vmatpush1.bf16.msra.mxu0 %v6302_v42  ;;  %4368 = vmatprep.subr.bf16.mxu1 %v6307_v43  ;;  %v6398_v42 = vld [vmem:[#allocation5 + $0xe50] ss:$8 sps:$4 sm:$0xff]   ;;  %v6403_v43 = vld [vmem:[#allocation5 + $0x464] ss:$8 sps:$4 sm:$0xff]  }
 0x128   :  { %4798 = vmatprep.subr.bf16.mxu0 %v6310_v44  ;;  %v6406_v44 = vld [vmem:[#allocation5 + $0xe64] ss:$8 sps:$4 sm:$0xff]  }
 0x12a   :  { %4369 = vmatpush1.bf16.msra.mxu1 %v6305_v45  ;;  %v6401_v45 = vld [vmem:[#allocation5 + $0x460] ss:$8 sps:$4 sm:$0xff]  }
 0x12b   :  { %4799 = vmatpush1.bf16.msra.mxu0 %v6308_v46  ;;  %4370 = vmatprep.subr.bf16.mxu1 %v6313_v47  ;;  %v6404_v46 = vld [vmem:[#allocation5 + $0xe60] ss:$8 sps:$4 sm:$0xff]   ;;  %v6409_v47 = vld [vmem:[#allocation5 + $0x474] ss:$8 sps:$4 sm:$0xff]  }
 0x12c   :  { %4800 = vmatprep.subr.bf16.mxu0 %v6316_v48  ;;  %v6412_v48 = vld [vmem:[#allocation5 + $0xe74] ss:$8 sps:$4 sm:$0xff]  }
 0x12e   :  { %4371 = vmatpush1.bf16.msra.mxu1 %v6311_v49  ;;  %v6407_v49 = vld [vmem:[#allocation5 + $0x470] ss:$8 sps:$4 sm:$0xff]  }
 0x12f   :  { %4801 = vmatpush1.bf16.msra.mxu0 %v6314_v50  ;;  %4372 = vmatprep.subr.bf16.mxu1 %v6319_v51  ;;  %v6410_v50 = vld [vmem:[#allocation5 + $0xe70] ss:$8 sps:$4 sm:$0xff]   ;;  %v6415_v51 = vld [vmem:[#allocation5 + $0x484] ss:$8 sps:$4 sm:$0xff]  }
 0x130   :  { %4802 = vmatprep.subr.bf16.mxu0 %v6322_v52  ;;  %v6418_v52 = vld [vmem:[#allocation5 + $0xe84] ss:$8 sps:$4 sm:$0xff]  }
 0x132   :  { %4373 = vmatpush1.bf16.msra.mxu1 %v6317_v53  ;;  %v6413_v53 = vld [vmem:[#allocation5 + $0x480] ss:$8 sps:$4 sm:$0xff]  }
 0x133   :  { %4803 = vmatpush1.bf16.msra.mxu0 %v6320_v54  ;;  %4374 = vmatprep.subr.bf16.mxu1 %v6325_v55  ;;  %v6416_v54 = vld [vmem:[#allocation5 + $0xe80] ss:$8 sps:$4 sm:$0xff]   ;;  %v6421_v55 = vld [vmem:[#allocation5 + $0x494] ss:$8 sps:$4 sm:$0xff]  }
 0x134   :  { %4804 = vmatprep.subr.bf16.mxu0 %v6328_v56  ;;  %v6424_v56 = vld [vmem:[#allocation5 + $0xe94] ss:$8 sps:$4 sm:$0xff]  }
 0x136   :  { %4375 = vmatpush1.bf16.msra.mxu1 %v6323_v57  ;;  %v6419_v57 = vld [vmem:[#allocation5 + $0x490] ss:$8 sps:$4 sm:$0xff]  }
 0x137   :  { %4805 = vmatpush1.bf16.msra.mxu0 %v6326_v58  ;;  %4376 = vmatprep.subr.bf16.mxu1 %v6331_v59  ;;  %v6422_v58 = vld [vmem:[#allocation5 + $0xe90] ss:$8 sps:$4 sm:$0xff]   ;;  %v6427_v59 = vld [vmem:[#allocation5 + $0x4a4] ss:$8 sps:$4 sm:$0xff]  }
 0x138   :  { %4806 = vmatprep.subr.bf16.mxu0 %v6334_v60  ;;  %v6430_v60 = vld [vmem:[#allocation5 + $0xea4] ss:$8 sps:$4 sm:$0xff]  }
 0x13a   :  { %4377 = vmatpush1.bf16.msra.mxu1 %v6329_v61  ;;  %v6425_v61 = vld [vmem:[#allocation5 + $0x4a0] ss:$8 sps:$4 sm:$0xff]  }
 0x13b   :  { %4807 = vmatpush1.bf16.msra.mxu0 %v6332_v62  ;;  %4378 = vmatprep.subr.bf16.mxu1 %v6337_v63  ;;  %v6428_v62 = vld [vmem:[#allocation5 + $0xea0] ss:$8 sps:$4 sm:$0xff]   ;;  %v6433_v63 = vld [vmem:[#allocation5 + $0x4b4] ss:$8 sps:$4 sm:$0xff]  }
 0x13c   :  { %4808 = vmatprep.subr.bf16.mxu0 %v6340_v0  ;;  %v6436_v0 = vld [vmem:[#allocation5 + $0xeb4] ss:$8 sps:$4 sm:$0xff]  }
 0x13e   :  { %4379 = vmatpush1.bf16.msra.mxu1 %v6335_v1  ;;  %v6431_v1 = vld [vmem:[#allocation5 + $0x4b0] ss:$8 sps:$4 sm:$0xff]  }
 0x13f   :  { %4809 = vmatpush1.bf16.msra.mxu0 %v6338_v2  ;;  %4380 = vmatprep.subr.bf16.mxu1 %v6343_v3  ;;  %v6434_v2 = vld [vmem:[#allocation5 + $0xeb0] ss:$8 sps:$4 sm:$0xff]   ;;  %v6439_v3 = vld [vmem:[#allocation5 + $0x4c4] ss:$8 sps:$4 sm:$0xff]  }
 0x140   :  { %4810 = vmatprep.subr.bf16.mxu0 %v6346_v4  ;;  %v6442_v4 = vld [vmem:[#allocation5 + $0xec4] ss:$8 sps:$4 sm:$0xff]  }
 0x142   :  { %4381 = vmatpush1.bf16.msra.mxu1 %v6341_v5  ;;  %v6437_v5 = vld [vmem:[#allocation5 + $0x4c0] ss:$8 sps:$4 sm:$0xff]  }
 0x143   :  { %4811 = vmatpush1.bf16.msra.mxu0 %v6344_v6  ;;  %4382 = vmatprep.subr.bf16.mxu1 %v6349_v7  ;;  %v6440_v6 = vld [vmem:[#allocation5 + $0xec0] ss:$8 sps:$4 sm:$0xff]   ;;  %v6445_v7 = vld [vmem:[#allocation5 + $0x4d4] ss:$8 sps:$4 sm:$0xff]  }
 0x144   :  { %4812 = vmatprep.subr.bf16.mxu0 %v6352_v8  ;;  %v6448_v8 = vld [vmem:[#allocation5 + $0xed4] ss:$8 sps:$4 sm:$0xff]  }
 0x146   :  { %4383 = vmatpush1.bf16.msra.mxu1 %v6347_v9  ;;  %v6443_v9 = vld [vmem:[#allocation5 + $0x4d0] ss:$8 sps:$4 sm:$0xff]  }
 0x147   :  { %4813 = vmatpush1.bf16.msra.mxu0 %v6350_v10  ;;  %4384 = vmatprep.subr.bf16.mxu1 %v6355_v11  ;;  %v6446_v10 = vld [vmem:[#allocation5 + $0xed0] ss:$8 sps:$4 sm:$0xff]   ;;  %v6451_v11 = vld [vmem:[#allocation5 + $0x4e4] ss:$8 sps:$4 sm:$0xff]  }
 0x148   :  { %4814 = vmatprep.subr.bf16.mxu0 %v6358_v12  ;;  %v6454_v12 = vld [vmem:[#allocation5 + $0xee4] ss:$8 sps:$4 sm:$0xff]  }
 0x14a   :  { %4385 = vmatpush1.bf16.msra.mxu1 %v6353_v13  ;;  %v6449_v13 = vld [vmem:[#allocation5 + $0x4e0] ss:$8 sps:$4 sm:$0xff]  }
 0x14b   :  { %4815 = vmatpush1.bf16.msra.mxu0 %v6356_v14  ;;  %4397 = vmatprep.subr.bf16.mxu1 %v6364_v15  ;;  %v6452_v14 = vld [vmem:[#allocation5 + $0xee0] ss:$8 sps:$4 sm:$0xff]   ;;  %v6457_v15 = vld [vmem:[#allocation5 + $0x4f4] ss:$8 sps:$4 sm:$0xff]  }
 0x14c   :  { %4827 = vmatprep.subr.bf16.mxu0 %v6370_v16  ;;  %v6460_v16 = vld [vmem:[#allocation5 + $0xef4] ss:$8 sps:$4 sm:$0xff]  }
 0x14d   :  { %4387 = vmatmul.mubr.bf16.vlgmr.msra.gmra.mrb[0].mxu1 %v6359_v17  ;;  %v6455_v17 = vld [vmem:[#allocation5 + $0x4f0] ss:$8 sps:$4 sm:$0xff]  }
 0x14e   :  { %4817 = vmatmul.mubr.bf16.vlgmr.msra.gmra.mrb[0].mxu0 %v6365_v19  ;;  %4398 = vmatpush1.bf16.msra.mxu1 %v6362_v18  ;;  %v6458_v18 = vld [vmem:[#allocation5 + $0xef0] ss:$8 sps:$4 sm:$0xff]   ;;  %v6466_v19 = vld [vmem:[#allocation5 + $0x504] ss:$8 sps:$4 sm:$0xff]  }
 0x14f   :  { %4828 = vmatpush1.bf16.msra.mxu0 %v6368_v20  ;;  %4399 = vmatprep.subr.bf16.mxu1 %v6373_v21  ;;  %v6461_v20 = vld [vmem:[#allocation3 + $0x20] ss:$164 sps:$4 sm:$0xff]   ;;  %v6467_v21 = vld [vmem:[#allocation3 + $0x70] ss:$164 sps:$4 sm:$0xff]  }
 0x150   :  { %4829 = vmatprep.subr.bf16.mxu0 %v6376_v22  ;;  %4429 = vmatprep.mubr.bf16.mxu1 %v6463_v23  ;;  %v6472_v22 = vld [vmem:[#allocation5 + $0xf04] ss:$8 sps:$4 sm:$0xff]   ;;  %v6464_v23 = vld [vmem:[#allocation5 + $0x500] ss:$8 sps:$4 sm:$0xff]  }
 0x151   :  { %4859 = vmatprep.mubr.bf16.mxu0 %v6469_v24  ;;  %v6470_v24 = vld [vmem:[#allocation5 + $0xf00] ss:$8 sps:$4 sm:$0xff]  }
 0x152   :  { %4400 = vmatpush1.bf16.msra.mxu1 %v6371_v25  ;;  %v6475_v25 = vld [vmem:[#allocation5 + $0x514] ss:$8 sps:$4 sm:$0xff]  }
 0x153   :  { %4830 = vmatpush1.bf16.msra.mxu0 %v6374_v26  ;;  %4401 = vmatprep.subr.bf16.mxu1 %v6379_v27  ;;  %v6478_v26 = vld [vmem:[#allocation5 + $0xf14] ss:$8 sps:$4 sm:$0xff]   ;;  %v6565_v27 = vld [vmem:[#allocation3 + $0x2c] ss:$164 sps:$4 sm:$0xff]  }
 0x154   :  { %4831 = vmatprep.subr.bf16.mxu0 %v6382_v28  ;;  %v6571_v28 = vld [vmem:[#allocation3 + $0x7c] ss:$164 sps:$4 sm:$0xff]  }
 0x156   :  { %4402 = vmatpush1.bf16.msra.mxu1 %v6377_v29  ;;  %v6473_v29 = vld [vmem:[#allocation5 + $0x510] ss:$8 sps:$4 sm:$0xff]  }
 0x157   :  { %4832 = vmatpush1.bf16.msra.mxu0 %v6380_v30  ;;  %4403 = vmatprep.subr.bf16.mxu1 %v6385_v31  ;;  %v6476_v30 = vld [vmem:[#allocation5 + $0xf10] ss:$8 sps:$4 sm:$0xff]   ;;  %v6481_v31 = vld [vmem:[#allocation5 + $0x524] ss:$8 sps:$4 sm:$0xff]  }
 0x158   :  { %4833 = vmatprep.subr.bf16.mxu0 %v6388_v32  ;;  %v6484_v32 = vld [vmem:[#allocation5 + $0xf24] ss:$8 sps:$4 sm:$0xff]  }
 0x15a   :  { %4404 = vmatpush1.bf16.msra.mxu1 %v6383_v33  ;;  %v6479_v33 = vld [vmem:[#allocation5 + $0x520] ss:$8 sps:$4 sm:$0xff]  }
 0x15b   :  { %4834 = vmatpush1.bf16.msra.mxu0 %v6386_v34  ;;  %4405 = vmatprep.subr.bf16.mxu1 %v6391_v35  ;;  %v6482_v34 = vld [vmem:[#allocation5 + $0xf20] ss:$8 sps:$4 sm:$0xff]   ;;  %v6487_v35 = vld [vmem:[#allocation5 + $0x534] ss:$8 sps:$4 sm:$0xff]  }
 0x15c   :  { %4835 = vmatprep.subr.bf16.mxu0 %v6394_v36  ;;  %v6490_v36 = vld [vmem:[#allocation5 + $0xf34] ss:$8 sps:$4 sm:$0xff]  }
 0x15e   :  { %4406 = vmatpush1.bf16.msra.mxu1 %v6389_v37  ;;  %v6485_v37 = vld [vmem:[#allocation5 + $0x530] ss:$8 sps:$4 sm:$0xff]  }
 0x15f   :  { %4836 = vmatpush1.bf16.msra.mxu0 %v6392_v38  ;;  %4407 = vmatprep.subr.bf16.mxu1 %v6397_v39  ;;  %v6488_v38 = vld [vmem:[#allocation5 + $0xf30] ss:$8 sps:$4 sm:$0xff]   ;;  %v6493_v39 = vld [vmem:[#allocation5 + $0x544] ss:$8 sps:$4 sm:$0xff]  }
 0x160   :  { %4837 = vmatprep.subr.bf16.mxu0 %v6400_v40  ;;  %v6496_v40 = vld [vmem:[#allocation5 + $0xf44] ss:$8 sps:$4 sm:$0xff]  }
 0x162   :  { %4408 = vmatpush1.bf16.msra.mxu1 %v6395_v41  ;;  %v6491_v41 = vld [vmem:[#allocation5 + $0x540] ss:$8 sps:$4 sm:$0xff]  }
 0x163   :  { %4838 = vmatpush1.bf16.msra.mxu0 %v6398_v42  ;;  %4409 = vmatprep.subr.bf16.mxu1 %v6403_v43  ;;  %v6494_v42 = vld [vmem:[#allocation5 + $0xf40] ss:$8 sps:$4 sm:$0xff]   ;;  %v6499_v43 = vld [vmem:[#allocation5 + $0x554] ss:$8 sps:$4 sm:$0xff]  }
 0x164   :  { %4839 = vmatprep.subr.bf16.mxu0 %v6406_v44  ;;  %v6502_v44 = vld [vmem:[#allocation5 + $0xf54] ss:$8 sps:$4 sm:$0xff]  }
 0x166   :  { %4410 = vmatpush1.bf16.msra.mxu1 %v6401_v45  ;;  %v6497_v45 = vld [vmem:[#allocation5 + $0x550] ss:$8 sps:$4 sm:$0xff]  }
 0x167   :  { %4840 = vmatpush1.bf16.msra.mxu0 %v6404_v46  ;;  %4411 = vmatprep.subr.bf16.mxu1 %v6409_v47  ;;  %v6500_v46 = vld [vmem:[#allocation5 + $0xf50] ss:$8 sps:$4 sm:$0xff]   ;;  %v6505_v47 = vld [vmem:[#allocation5 + $0x564] ss:$8 sps:$4 sm:$0xff]  }
 0x168   :  { %4841 = vmatprep.subr.bf16.mxu0 %v6412_v48  ;;  %v6508_v48 = vld [vmem:[#allocation5 + $0xf64] ss:$8 sps:$4 sm:$0xff]  }
 0x16a   :  { %4412 = vmatpush1.bf16.msra.mxu1 %v6407_v49  ;;  %v6503_v49 = vld [vmem:[#allocation5 + $0x560] ss:$8 sps:$4 sm:$0xff]  }
 0x16b   :  { %4842 = vmatpush1.bf16.msra.mxu0 %v6410_v50  ;;  %4413 = vmatprep.subr.bf16.mxu1 %v6415_v51  ;;  %v6506_v50 = vld [vmem:[#allocation5 + $0xf60] ss:$8 sps:$4 sm:$0xff]   ;;  %v6511_v51 = vld [vmem:[#allocation5 + $0x574] ss:$8 sps:$4 sm:$0xff]  }
 0x16c   :  { %4843 = vmatprep.subr.bf16.mxu0 %v6418_v52  ;;  %v6514_v52 = vld [vmem:[#allocation5 + $0xf74] ss:$8 sps:$4 sm:$0xff]  }
 0x16e   :  { %4414 = vmatpush1.bf16.msra.mxu1 %v6413_v53  ;;  %v6509_v53 = vld [vmem:[#allocation5 + $0x570] ss:$8 sps:$4 sm:$0xff]  }
 0x16f   :  { %4844 = vmatpush1.bf16.msra.mxu0 %v6416_v54  ;;  %4415 = vmatprep.subr.bf16.mxu1 %v6421_v55  ;;  %v6512_v54 = vld [vmem:[#allocation5 + $0xf70] ss:$8 sps:$4 sm:$0xff]   ;;  %v6517_v55 = vld [vmem:[#allocation5 + $0x584] ss:$8 sps:$4 sm:$0xff]  }
 0x170   :  { %4845 = vmatprep.subr.bf16.mxu0 %v6424_v56  ;;  %v6520_v56 = vld [vmem:[#allocation5 + $0xf84] ss:$8 sps:$4 sm:$0xff]  }
 0x172   :  { %4416 = vmatpush1.bf16.msra.mxu1 %v6419_v57  ;;  %v6515_v57 = vld [vmem:[#allocation5 + $0x580] ss:$8 sps:$4 sm:$0xff]  }
 0x173   :  { %4846 = vmatpush1.bf16.msra.mxu0 %v6422_v58  ;;  %4417 = vmatprep.subr.bf16.mxu1 %v6427_v59  ;;  %v6518_v58 = vld [vmem:[#allocation5 + $0xf80] ss:$8 sps:$4 sm:$0xff]   ;;  %v6523_v59 = vld [vmem:[#allocation5 + $0x594] ss:$8 sps:$4 sm:$0xff]  }
 0x174   :  { %4847 = vmatprep.subr.bf16.mxu0 %v6430_v60  ;;  %v6526_v60 = vld [vmem:[#allocation5 + $0xf94] ss:$8 sps:$4 sm:$0xff]  }
 0x176   :  { %4418 = vmatpush1.bf16.msra.mxu1 %v6425_v61  ;;  %v6521_v61 = vld [vmem:[#allocation5 + $0x590] ss:$8 sps:$4 sm:$0xff]  }
 0x177   :  { %4848 = vmatpush1.bf16.msra.mxu0 %v6428_v62  ;;  %4419 = vmatprep.subr.bf16.mxu1 %v6433_v63  ;;  %v6524_v62 = vld [vmem:[#allocation5 + $0xf90] ss:$8 sps:$4 sm:$0xff]   ;;  %v6529_v63 = vld [vmem:[#allocation5 + $0x5a4] ss:$8 sps:$4 sm:$0xff]  }
 0x178   :  { %4849 = vmatprep.subr.bf16.mxu0 %v6436_v0  ;;  %v6532_v0 = vld [vmem:[#allocation5 + $0xfa4] ss:$8 sps:$4 sm:$0xff]  }
 0x17a   :  { %4420 = vmatpush1.bf16.msra.mxu1 %v6431_v1  ;;  %v6527_v1 = vld [vmem:[#allocation5 + $0x5a0] ss:$8 sps:$4 sm:$0xff]  }
 0x17b   :  { %4850 = vmatpush1.bf16.msra.mxu0 %v6434_v2  ;;  %4421 = vmatprep.subr.bf16.mxu1 %v6439_v3  ;;  %v6530_v2 = vld [vmem:[#allocation5 + $0xfa0] ss:$8 sps:$4 sm:$0xff]   ;;  %v6535_v3 = vld [vmem:[#allocation5 + $0x5b4] ss:$8 sps:$4 sm:$0xff]  }
 0x17c   :  { %4851 = vmatprep.subr.bf16.mxu0 %v6442_v4  ;;  %v6538_v4 = vld [vmem:[#allocation5 + $0xfb4] ss:$8 sps:$4 sm:$0xff]  }
 0x17e   :  { %4422 = vmatpush1.bf16.msra.mxu1 %v6437_v5  ;;  %v6533_v5 = vld [vmem:[#allocation5 + $0x5b0] ss:$8 sps:$4 sm:$0xff]  }
 0x17f   :  { %4852 = vmatpush1.bf16.msra.mxu0 %v6440_v6  ;;  %4423 = vmatprep.subr.bf16.mxu1 %v6445_v7  ;;  %v6536_v6 = vld [vmem:[#allocation5 + $0xfb0] ss:$8 sps:$4 sm:$0xff]   ;;  %v6541_v7 = vld [vmem:[#allocation5 + $0x5c4] ss:$8 sps:$4 sm:$0xff]  }
 0x180   :  { %4853 = vmatprep.subr.bf16.mxu0 %v6448_v8  ;;  %v6544_v8 = vld [vmem:[#allocation5 + $0xfc4] ss:$8 sps:$4 sm:$0xff]  }
 0x182   :  { %4424 = vmatpush1.bf16.msra.mxu1 %v6443_v9  ;;  %v6539_v9 = vld [vmem:[#allocation5 + $0x5c0] ss:$8 sps:$4 sm:$0xff]  }
 0x183   :  { %4854 = vmatpush1.bf16.msra.mxu0 %v6446_v10  ;;  %4425 = vmatprep.subr.bf16.mxu1 %v6451_v11  ;;  %v6542_v10 = vld [vmem:[#allocation5 + $0xfc0] ss:$8 sps:$4 sm:$0xff]   ;;  %v6547_v11 = vld [vmem:[#allocation5 + $0x5d4] ss:$8 sps:$4 sm:$0xff]  }
 0x184   :  { %4855 = vmatprep.subr.bf16.mxu0 %v6454_v12  ;;  %v6550_v12 = vld [vmem:[#allocation5 + $0xfd4] ss:$8 sps:$4 sm:$0xff]  }
 0x186   :  { %4426 = vmatpush1.bf16.msra.mxu1 %v6449_v13  ;;  %v6545_v13 = vld [vmem:[#allocation5 + $0x5d0] ss:$8 sps:$4 sm:$0xff]  }
 0x187   :  { %4856 = vmatpush1.bf16.msra.mxu0 %v6452_v14  ;;  %4427 = vmatprep.subr.bf16.mxu1 %v6457_v15  ;;  %v6548_v14 = vld [vmem:[#allocation5 + $0xfd0] ss:$8 sps:$4 sm:$0xff]   ;;  %v6553_v15 = vld [vmem:[#allocation5 + $0x5e4] ss:$8 sps:$4 sm:$0xff]  }
 0x188   :  { %4857 = vmatprep.subr.bf16.mxu0 %v6460_v16  ;;  %v6556_v16 = vld [vmem:[#allocation5 + $0xfe4] ss:$8 sps:$4 sm:$0xff]  }
 0x18a   :  { %4428 = vmatpush1.bf16.msra.mxu1 %v6455_v17  ;;  %v6551_v17 = vld [vmem:[#allocation5 + $0x5e0] ss:$8 sps:$4 sm:$0xff]  }
 0x18b   :  { %4858 = vmatpush1.bf16.msra.mxu0 %v6458_v18  ;;  %4440 = vmatprep.subr.bf16.mxu1 %v6466_v19  ;;  %v6554_v18 = vld [vmem:[#allocation5 + $0xfe0] ss:$8 sps:$4 sm:$0xff]   ;;  %v6559_v19 = vld [vmem:[#allocation5 + $0x5f4] ss:$8 sps:$4 sm:$0xff]  }
 0x18c   :  { %4870 = vmatprep.subr.bf16.mxu0 %v6472_v22  ;;  %v6560_v22 = vld [vmem:[#allocation5 + $0xff0] ss:$8 sps:$4 sm:$0xff]  }
 0x18d   :  { %4430 = vmatmul.mubr.bf16.vlgmr.msra.gmra.mrb[0].mxu1 %v6461_v20  ;;  %v6562_v20 = vld [vmem:[#allocation5 + $0xff4] ss:$8 sps:$4 sm:$0xff]  }
 0x18e   :  { %4860 = vmatmul.mubr.bf16.vlgmr.msra.gmra.mrb[0].mxu0 %v6467_v21  ;;  %4441 = vmatpush1.bf16.msra.mxu1 %v6464_v23  ;;  %v6557_v21 = vld [vmem:[#allocation5 + $0x5f0] ss:$8 sps:$4 sm:$0xff]   ;;  %v6568_v23 = vld [vmem:[#allocation5 + $0x604] ss:$8 sps:$4 sm:$0xff]  }
 0x18f   :  { %4871 = vmatpush1.bf16.msra.mxu0 %v6470_v24  ;;  %4442 = vmatprep.subr.bf16.mxu1 %v6475_v25  ;;  %v6563_v24 = vld [vmem:[#allocation3 + $0x28] ss:$164 sps:$4 sm:$0xff]   ;;  %v6569_v25 = vld [vmem:[#allocation3 + $0x78] ss:$164 sps:$4 sm:$0xff]  }
 0x190   :  { %4872 = vmatprep.subr.bf16.mxu0 %v6478_v26  ;;  %4472 = vmatprep.mubr.bf16.mxu1 %v6565_v27  ;;  %v6574_v26 = vld [vmem:[#allocation5 + $0x1004] ss:$8 sps:$4 sm:$0xff]   ;;  %v6566_v27 = vld [vmem:[#allocation5 + $0x600] ss:$8 sps:$4 sm:$0xff]  }
 0x191   :  { %4902 = vmatprep.mubr.bf16.mxu0 %v6571_v28  ;;  %v6572_v28 = vld [vmem:[#allocation5 + $0x1000] ss:$8 sps:$4 sm:$0xff]  }
 0x192   :  { %4443 = vmatpush1.bf16.msra.mxu1 %v6473_v29  ;;  %v6577_v29 = vld [vmem:[#allocation5 + $0x614] ss:$8 sps:$4 sm:$0xff]  }
 0x193   :  { %4873 = vmatpush1.bf16.msra.mxu0 %v6476_v30  ;;  %4444 = vmatprep.subr.bf16.mxu1 %v6481_v31  ;;  %v6580_v30 = vld [vmem:[#allocation5 + $0x1014] ss:$8 sps:$4 sm:$0xff]   ;;  %v6667_v31 = vld [vmem:[#allocation3 + $0x34] ss:$164 sps:$4 sm:$0xff]  }
 0x194   :  { %4874 = vmatprep.subr.bf16.mxu0 %v6484_v32  ;;  %v6673_v32 = vld [vmem:[#allocation3 + $0x84] ss:$164 sps:$4 sm:$0xff]  }
 0x196   :  { %4445 = vmatpush1.bf16.msra.mxu1 %v6479_v33  ;;  %v6575_v33 = vld [vmem:[#allocation5 + $0x610] ss:$8 sps:$4 sm:$0xff]  }
 0x197   :  { %4875 = vmatpush1.bf16.msra.mxu0 %v6482_v34  ;;  %4446 = vmatprep.subr.bf16.mxu1 %v6487_v35  ;;  %v6578_v34 = vld [vmem:[#allocation5 + $0x1010] ss:$8 sps:$4 sm:$0xff]   ;;  %v6583_v35 = vld [vmem:[#allocation5 + $0x624] ss:$8 sps:$4 sm:$0xff]  }
 0x198   :  { %4876 = vmatprep.subr.bf16.mxu0 %v6490_v36  ;;  %v6586_v36 = vld [vmem:[#allocation5 + $0x1024] ss:$8 sps:$4 sm:$0xff]  }
 0x19a   :  { %4447 = vmatpush1.bf16.msra.mxu1 %v6485_v37  ;;  %v6581_v37 = vld [vmem:[#allocation5 + $0x620] ss:$8 sps:$4 sm:$0xff]  }
 0x19b   :  { %4877 = vmatpush1.bf16.msra.mxu0 %v6488_v38  ;;  %4448 = vmatprep.subr.bf16.mxu1 %v6493_v39  ;;  %v6584_v38 = vld [vmem:[#allocation5 + $0x1020] ss:$8 sps:$4 sm:$0xff]   ;;  %v6589_v39 = vld [vmem:[#allocation5 + $0x634] ss:$8 sps:$4 sm:$0xff]  }
 0x19c   :  { %4878 = vmatprep.subr.bf16.mxu0 %v6496_v40  ;;  %v6592_v40 = vld [vmem:[#allocation5 + $0x1034] ss:$8 sps:$4 sm:$0xff]  }
 0x19e   :  { %4449 = vmatpush1.bf16.msra.mxu1 %v6491_v41  ;;  %v6587_v41 = vld [vmem:[#allocation5 + $0x630] ss:$8 sps:$4 sm:$0xff]  }
 0x19f   :  { %4879 = vmatpush1.bf16.msra.mxu0 %v6494_v42  ;;  %4450 = vmatprep.subr.bf16.mxu1 %v6499_v43  ;;  %v6590_v42 = vld [vmem:[#allocation5 + $0x1030] ss:$8 sps:$4 sm:$0xff]   ;;  %v6595_v43 = vld [vmem:[#allocation5 + $0x644] ss:$8 sps:$4 sm:$0xff]  }
 0x1a0   :  { %4880 = vmatprep.subr.bf16.mxu0 %v6502_v44  ;;  %v6598_v44 = vld [vmem:[#allocation5 + $0x1044] ss:$8 sps:$4 sm:$0xff]  }
 0x1a2   :  { %4451 = vmatpush1.bf16.msra.mxu1 %v6497_v45  ;;  %v6593_v45 = vld [vmem:[#allocation5 + $0x640] ss:$8 sps:$4 sm:$0xff]  }
 0x1a3   :  { %4881 = vmatpush1.bf16.msra.mxu0 %v6500_v46  ;;  %4452 = vmatprep.subr.bf16.mxu1 %v6505_v47  ;;  %v6596_v46 = vld [vmem:[#allocation5 + $0x1040] ss:$8 sps:$4 sm:$0xff]   ;;  %v6601_v47 = vld [vmem:[#allocation5 + $0x654] ss:$8 sps:$4 sm:$0xff]  }
 0x1a4   :  { %4882 = vmatprep.subr.bf16.mxu0 %v6508_v48  ;;  %v6604_v48 = vld [vmem:[#allocation5 + $0x1054] ss:$8 sps:$4 sm:$0xff]  }
 0x1a6   :  { %4453 = vmatpush1.bf16.msra.mxu1 %v6503_v49  ;;  %v6599_v49 = vld [vmem:[#allocation5 + $0x650] ss:$8 sps:$4 sm:$0xff]  }
 0x1a7   :  { %4883 = vmatpush1.bf16.msra.mxu0 %v6506_v50  ;;  %4454 = vmatprep.subr.bf16.mxu1 %v6511_v51  ;;  %v6602_v50 = vld [vmem:[#allocation5 + $0x1050] ss:$8 sps:$4 sm:$0xff]   ;;  %v6607_v51 = vld [vmem:[#allocation5 + $0x664] ss:$8 sps:$4 sm:$0xff]  }
 0x1a8   :  { %4884 = vmatprep.subr.bf16.mxu0 %v6514_v52  ;;  %v6610_v52 = vld [vmem:[#allocation5 + $0x1064] ss:$8 sps:$4 sm:$0xff]  }
 0x1aa   :  { %4455 = vmatpush1.bf16.msra.mxu1 %v6509_v53  ;;  %v6605_v53 = vld [vmem:[#allocation5 + $0x660] ss:$8 sps:$4 sm:$0xff]  }
 0x1ab   :  { %4885 = vmatpush1.bf16.msra.mxu0 %v6512_v54  ;;  %4456 = vmatprep.subr.bf16.mxu1 %v6517_v55  ;;  %v6608_v54 = vld [vmem:[#allocation5 + $0x1060] ss:$8 sps:$4 sm:$0xff]   ;;  %v6613_v55 = vld [vmem:[#allocation5 + $0x674] ss:$8 sps:$4 sm:$0xff]  }
 0x1ac   :  { %4886 = vmatprep.subr.bf16.mxu0 %v6520_v56  ;;  %v6616_v56 = vld [vmem:[#allocation5 + $0x1074] ss:$8 sps:$4 sm:$0xff]  }
 0x1ae   :  { %4457 = vmatpush1.bf16.msra.mxu1 %v6515_v57  ;;  %v6611_v57 = vld [vmem:[#allocation5 + $0x670] ss:$8 sps:$4 sm:$0xff]  }
 0x1af   :  { %4887 = vmatpush1.bf16.msra.mxu0 %v6518_v58  ;;  %4458 = vmatprep.subr.bf16.mxu1 %v6523_v59  ;;  %v6614_v58 = vld [vmem:[#allocation5 + $0x1070] ss:$8 sps:$4 sm:$0xff]   ;;  %v6619_v59 = vld [vmem:[#allocation5 + $0x684] ss:$8 sps:$4 sm:$0xff]  }
 0x1b0   :  { %4888 = vmatprep.subr.bf16.mxu0 %v6526_v60  ;;  %v6622_v60 = vld [vmem:[#allocation5 + $0x1084] ss:$8 sps:$4 sm:$0xff]  }
 0x1b2   :  { %4459 = vmatpush1.bf16.msra.mxu1 %v6521_v61  ;;  %v6617_v61 = vld [vmem:[#allocation5 + $0x680] ss:$8 sps:$4 sm:$0xff]  }
 0x1b3   :  { %4889 = vmatpush1.bf16.msra.mxu0 %v6524_v62  ;;  %4460 = vmatprep.subr.bf16.mxu1 %v6529_v63  ;;  %v6620_v62 = vld [vmem:[#allocation5 + $0x1080] ss:$8 sps:$4 sm:$0xff]   ;;  %v6625_v63 = vld [vmem:[#allocation5 + $0x694] ss:$8 sps:$4 sm:$0xff]  }
 0x1b4   :  { %4890 = vmatprep.subr.bf16.mxu0 %v6532_v0  ;;  %v6628_v0 = vld [vmem:[#allocation5 + $0x1094] ss:$8 sps:$4 sm:$0xff]  }
 0x1b6   :  { %4461 = vmatpush1.bf16.msra.mxu1 %v6527_v1  ;;  %v6623_v1 = vld [vmem:[#allocation5 + $0x690] ss:$8 sps:$4 sm:$0xff]  }
 0x1b7   :  { %4891 = vmatpush1.bf16.msra.mxu0 %v6530_v2  ;;  %4462 = vmatprep.subr.bf16.mxu1 %v6535_v3  ;;  %v6626_v2 = vld [vmem:[#allocation5 + $0x1090] ss:$8 sps:$4 sm:$0xff]   ;;  %v6631_v3 = vld [vmem:[#allocation5 + $0x6a4] ss:$8 sps:$4 sm:$0xff]  }
 0x1b8   :  { %4892 = vmatprep.subr.bf16.mxu0 %v6538_v4  ;;  %v6634_v4 = vld [vmem:[#allocation5 + $0x10a4] ss:$8 sps:$4 sm:$0xff]  }
 0x1ba   :  { %4463 = vmatpush1.bf16.msra.mxu1 %v6533_v5  ;;  %v6629_v5 = vld [vmem:[#allocation5 + $0x6a0] ss:$8 sps:$4 sm:$0xff]  }
 0x1bb   :  { %4893 = vmatpush1.bf16.msra.mxu0 %v6536_v6  ;;  %4464 = vmatprep.subr.bf16.mxu1 %v6541_v7  ;;  %v6632_v6 = vld [vmem:[#allocation5 + $0x10a0] ss:$8 sps:$4 sm:$0xff]   ;;  %v6637_v7 = vld [vmem:[#allocation5 + $0x6b4] ss:$8 sps:$4 sm:$0xff]  }
 0x1bc   :  { %4894 = vmatprep.subr.bf16.mxu0 %v6544_v8  ;;  %v6640_v8 = vld [vmem:[#allocation5 + $0x10b4] ss:$8 sps:$4 sm:$0xff]  }
 0x1be   :  { %4465 = vmatpush1.bf16.msra.mxu1 %v6539_v9  ;;  %v6635_v9 = vld [vmem:[#allocation5 + $0x6b0] ss:$8 sps:$4 sm:$0xff]  }
 0x1bf   :  { %4895 = vmatpush1.bf16.msra.mxu0 %v6542_v10  ;;  %4466 = vmatprep.subr.bf16.mxu1 %v6547_v11  ;;  %v6638_v10 = vld [vmem:[#allocation5 + $0x10b0] ss:$8 sps:$4 sm:$0xff]   ;;  %v6643_v11 = vld [vmem:[#allocation5 + $0x6c4] ss:$8 sps:$4 sm:$0xff]  }
 0x1c0   :  { %4896 = vmatprep.subr.bf16.mxu0 %v6550_v12  ;;  %v6646_v12 = vld [vmem:[#allocation5 + $0x10c4] ss:$8 sps:$4 sm:$0xff]  }
 0x1c2   :  { %4467 = vmatpush1.bf16.msra.mxu1 %v6545_v13  ;;  %v6641_v13 = vld [vmem:[#allocation5 + $0x6c0] ss:$8 sps:$4 sm:$0xff]  }
 0x1c3   :  { %4897 = vmatpush1.bf16.msra.mxu0 %v6548_v14  ;;  %4468 = vmatprep.subr.bf16.mxu1 %v6553_v15  ;;  %v6644_v14 = vld [vmem:[#allocation5 + $0x10c0] ss:$8 sps:$4 sm:$0xff]   ;;  %v6649_v15 = vld [vmem:[#allocation5 + $0x6d4] ss:$8 sps:$4 sm:$0xff]  }
 0x1c4   :  { %4898 = vmatprep.subr.bf16.mxu0 %v6556_v16  ;;  %v6652_v16 = vld [vmem:[#allocation5 + $0x10d4] ss:$8 sps:$4 sm:$0xff]  }
 0x1c6   :  { %4469 = vmatpush1.bf16.msra.mxu1 %v6551_v17  ;;  %v6647_v17 = vld [vmem:[#allocation5 + $0x6d0] ss:$8 sps:$4 sm:$0xff]  }
 0x1c7   :  { %4899 = vmatpush1.bf16.msra.mxu0 %v6554_v18  ;;  %4470 = vmatprep.subr.bf16.mxu1 %v6559_v19  ;;  %v6650_v18 = vld [vmem:[#allocation5 + $0x10d0] ss:$8 sps:$4 sm:$0xff]   ;;  %v6655_v19 = vld [vmem:[#allocation5 + $0x6e4] ss:$8 sps:$4 sm:$0xff]  }
 0x1c8   :  { %4900 = vmatprep.subr.bf16.mxu0 %v6562_v20  ;;  %v6658_v20 = vld [vmem:[#allocation5 + $0x10e4] ss:$8 sps:$4 sm:$0xff]  }
 0x1ca   :  { %4471 = vmatpush1.bf16.msra.mxu1 %v6557_v21  ;;  %v6653_v21 = vld [vmem:[#allocation5 + $0x6e0] ss:$8 sps:$4 sm:$0xff]  }
 0x1cb   :  { %4901 = vmatpush1.bf16.msra.mxu0 %v6560_v22  ;;  %4483 = vmatprep.subr.bf16.mxu1 %v6568_v23  ;;  %v6656_v22 = vld [vmem:[#allocation5 + $0x10e0] ss:$8 sps:$4 sm:$0xff]   ;;  %v6661_v23 = vld [vmem:[#allocation5 + $0x6f4] ss:$8 sps:$4 sm:$0xff]  }
 0x1cc   :  { %4913 = vmatprep.subr.bf16.mxu0 %v6574_v26  ;;  %v6662_v26 = vld [vmem:[#allocation5 + $0x10f0] ss:$8 sps:$4 sm:$0xff]  }
 0x1cd   :  { %4473 = vmatmul.mubr.bf16.vlgmr.msra.gmra.mrb[0].mxu1 %v6563_v24  ;;  %v6664_v24 = vld [vmem:[#allocation5 + $0x10f4] ss:$8 sps:$4 sm:$0xff]  }
 0x1ce   :  { %4903 = vmatmul.mubr.bf16.vlgmr.msra.gmra.mrb[0].mxu0 %v6569_v25  ;;  %4484 = vmatpush1.bf16.msra.mxu1 %v6566_v27  ;;  %v6659_v25 = vld [vmem:[#allocation5 + $0x6f0] ss:$8 sps:$4 sm:$0xff]   ;;  %v6670_v27 = vld [vmem:[#allocation5 + $0x704] ss:$8 sps:$4 sm:$0xff]  }
 0x1cf   :  { %4914 = vmatpush1.bf16.msra.mxu0 %v6572_v28  ;;  %4485 = vmatprep.subr.bf16.mxu1 %v6577_v29  ;;  %v6676_v28 = vld [vmem:[#allocation5 + $0x1104] ss:$8 sps:$4 sm:$0xff]  }
 0x1d0   :  { %4915 = vmatprep.subr.bf16.mxu0 %v6580_v30  ;;  %4515 = vmatprep.mubr.bf16.mxu1 %v6667_v31  ;;  %v6665_v29 = vld [vmem:[#allocation3 + $0x30] ss:$164 sps:$4 sm:$0xff]   ;;  %v6671_v30 = vld [vmem:[#allocation3 + $0x80] ss:$164 sps:$4 sm:$0xff]  }
 0x1d1   :  { %4945 = vmatprep.mubr.bf16.mxu0 %v6673_v32  ;;  %v6668_v31 = vld [vmem:[#allocation5 + $0x700] ss:$8 sps:$4 sm:$0xff]  }
 0x1d2   :  { %4486 = vmatpush1.bf16.msra.mxu1 %v6575_v33  ;;  %v6674_v32 = vld [vmem:[#allocation5 + $0x1100] ss:$8 sps:$4 sm:$0xff]   ;;  %v6679_v33 = vld [vmem:[#allocation5 + $0x714] ss:$8 sps:$4 sm:$0xff]  }
 0x1d3   :  { %4916 = vmatpush1.bf16.msra.mxu0 %v6578_v34  ;;  %4487 = vmatprep.subr.bf16.mxu1 %v6583_v35  ;;  %v6682_v34 = vld [vmem:[#allocation5 + $0x1114] ss:$8 sps:$4 sm:$0xff]  }
 0x1d4   :  { %4917 = vmatprep.subr.bf16.mxu0 %v6586_v36  ;;  %v6769_v35 = vld [vmem:[#allocation3 + $0x3c] ss:$164 sps:$4 sm:$0xff]   ;;  %v6775_v36 = vld [vmem:[#allocation3 + $0x8c] ss:$164 sps:$4 sm:$0xff]  }
 0x1d6   :  { %4488 = vmatpush1.bf16.msra.mxu1 %v6581_v37  ;;  %v6677_v37 = vld [vmem:[#allocation5 + $0x710] ss:$8 sps:$4 sm:$0xff]  }
 0x1d7   :  { %4918 = vmatpush1.bf16.msra.mxu0 %v6584_v38  ;;  %4489 = vmatprep.subr.bf16.mxu1 %v6589_v39  ;;  %v6680_v38 = vld [vmem:[#allocation5 + $0x1110] ss:$8 sps:$4 sm:$0xff]   ;;  %v6685_v39 = vld [vmem:[#allocation5 + $0x724] ss:$8 sps:$4 sm:$0xff]  }
 0x1d8   :  { %4919 = vmatprep.subr.bf16.mxu0 %v6592_v40  ;;  %v6688_v40 = vld [vmem:[#allocation5 + $0x1124] ss:$8 sps:$4 sm:$0xff]  }
 0x1da   :  { %4490 = vmatpush1.bf16.msra.mxu1 %v6587_v41  ;;  %v6683_v41 = vld [vmem:[#allocation5 + $0x720] ss:$8 sps:$4 sm:$0xff]  }
 0x1db   :  { %4920 = vmatpush1.bf16.msra.mxu0 %v6590_v42  ;;  %4491 = vmatprep.subr.bf16.mxu1 %v6595_v43  ;;  %v6686_v42 = vld [vmem:[#allocation5 + $0x1120] ss:$8 sps:$4 sm:$0xff]   ;;  %v6691_v43 = vld [vmem:[#allocation5 + $0x734] ss:$8 sps:$4 sm:$0xff]  }
 0x1dc   :  { %4921 = vmatprep.subr.bf16.mxu0 %v6598_v44  ;;  %v6694_v44 = vld [vmem:[#allocation5 + $0x1134] ss:$8 sps:$4 sm:$0xff]  }
 0x1de   :  { %4492 = vmatpush1.bf16.msra.mxu1 %v6593_v45  ;;  %v6689_v45 = vld [vmem:[#allocation5 + $0x730] ss:$8 sps:$4 sm:$0xff]  }
 0x1df   :  { %4922 = vmatpush1.bf16.msra.mxu0 %v6596_v46  ;;  %4493 = vmatprep.subr.bf16.mxu1 %v6601_v47  ;;  %v6692_v46 = vld [vmem:[#allocation5 + $0x1130] ss:$8 sps:$4 sm:$0xff]   ;;  %v6697_v47 = vld [vmem:[#allocation5 + $0x744] ss:$8 sps:$4 sm:$0xff]  }
 0x1e0   :  { %4923 = vmatprep.subr.bf16.mxu0 %v6604_v48  ;;  %v6700_v48 = vld [vmem:[#allocation5 + $0x1144] ss:$8 sps:$4 sm:$0xff]  }
 0x1e2   :  { %4494 = vmatpush1.bf16.msra.mxu1 %v6599_v49  ;;  %v6695_v49 = vld [vmem:[#allocation5 + $0x740] ss:$8 sps:$4 sm:$0xff]  }
 0x1e3   :  { %4924 = vmatpush1.bf16.msra.mxu0 %v6602_v50  ;;  %4495 = vmatprep.subr.bf16.mxu1 %v6607_v51  ;;  %v6698_v50 = vld [vmem:[#allocation5 + $0x1140] ss:$8 sps:$4 sm:$0xff]   ;;  %v6703_v51 = vld [vmem:[#allocation5 + $0x754] ss:$8 sps:$4 sm:$0xff]  }
 0x1e4   :  { %4925 = vmatprep.subr.bf16.mxu0 %v6610_v52  ;;  %v6706_v52 = vld [vmem:[#allocation5 + $0x1154] ss:$8 sps:$4 sm:$0xff]  }
 0x1e6   :  { %4496 = vmatpush1.bf16.msra.mxu1 %v6605_v53  ;;  %v6701_v53 = vld [vmem:[#allocation5 + $0x750] ss:$8 sps:$4 sm:$0xff]  }
 0x1e7   :  { %4926 = vmatpush1.bf16.msra.mxu0 %v6608_v54  ;;  %4497 = vmatprep.subr.bf16.mxu1 %v6613_v55  ;;  %v6704_v54 = vld [vmem:[#allocation5 + $0x1150] ss:$8 sps:$4 sm:$0xff]   ;;  %v6709_v55 = vld [vmem:[#allocation5 + $0x764] ss:$8 sps:$4 sm:$0xff]  }
 0x1e8   :  { %4927 = vmatprep.subr.bf16.mxu0 %v6616_v56  ;;  %v6712_v56 = vld [vmem:[#allocation5 + $0x1164] ss:$8 sps:$4 sm:$0xff]  }
 0x1ea   :  { %4498 = vmatpush1.bf16.msra.mxu1 %v6611_v57  ;;  %v6707_v57 = vld [vmem:[#allocation5 + $0x760] ss:$8 sps:$4 sm:$0xff]  }
 0x1eb   :  { %4928 = vmatpush1.bf16.msra.mxu0 %v6614_v58  ;;  %4499 = vmatprep.subr.bf16.mxu1 %v6619_v59  ;;  %v6710_v58 = vld [vmem:[#allocation5 + $0x1160] ss:$8 sps:$4 sm:$0xff]   ;;  %v6715_v59 = vld [vmem:[#allocation5 + $0x774] ss:$8 sps:$4 sm:$0xff]  }
 0x1ec   :  { %4929 = vmatprep.subr.bf16.mxu0 %v6622_v60  ;;  %v6718_v60 = vld [vmem:[#allocation5 + $0x1174] ss:$8 sps:$4 sm:$0xff]  }
 0x1ee   :  { %4500 = vmatpush1.bf16.msra.mxu1 %v6617_v61  ;;  %v6713_v61 = vld [vmem:[#allocation5 + $0x770] ss:$8 sps:$4 sm:$0xff]  }
 0x1ef   :  { %4930 = vmatpush1.bf16.msra.mxu0 %v6620_v62  ;;  %4501 = vmatprep.subr.bf16.mxu1 %v6625_v63  ;;  %v6716_v62 = vld [vmem:[#allocation5 + $0x1170] ss:$8 sps:$4 sm:$0xff]   ;;  %v6721_v63 = vld [vmem:[#allocation5 + $0x784] ss:$8 sps:$4 sm:$0xff]  }
 0x1f0   :  { %4931 = vmatprep.subr.bf16.mxu0 %v6628_v0  ;;  %v6724_v0 = vld [vmem:[#allocation5 + $0x1184] ss:$8 sps:$4 sm:$0xff]  }
 0x1f2   :  { %4502 = vmatpush1.bf16.msra.mxu1 %v6623_v1  ;;  %v6719_v1 = vld [vmem:[#allocation5 + $0x780] ss:$8 sps:$4 sm:$0xff]  }
 0x1f3   :  { %4932 = vmatpush1.bf16.msra.mxu0 %v6626_v2  ;;  %4503 = vmatprep.subr.bf16.mxu1 %v6631_v3  ;;  %v6722_v2 = vld [vmem:[#allocation5 + $0x1180] ss:$8 sps:$4 sm:$0xff]   ;;  %v6727_v3 = vld [vmem:[#allocation5 + $0x794] ss:$8 sps:$4 sm:$0xff]  }
 0x1f4   :  { %4933 = vmatprep.subr.bf16.mxu0 %v6634_v4  ;;  %v6730_v4 = vld [vmem:[#allocation5 + $0x1194] ss:$8 sps:$4 sm:$0xff]  }
 0x1f6   :  { %4504 = vmatpush1.bf16.msra.mxu1 %v6629_v5  ;;  %v6725_v5 = vld [vmem:[#allocation5 + $0x790] ss:$8 sps:$4 sm:$0xff]  }
 0x1f7   :  { %4934 = vmatpush1.bf16.msra.mxu0 %v6632_v6  ;;  %4505 = vmatprep.subr.bf16.mxu1 %v6637_v7  ;;  %v6728_v6 = vld [vmem:[#allocation5 + $0x1190] ss:$8 sps:$4 sm:$0xff]   ;;  %v6733_v7 = vld [vmem:[#allocation5 + $0x7a4] ss:$8 sps:$4 sm:$0xff]  }
 0x1f8   :  { %4935 = vmatprep.subr.bf16.mxu0 %v6640_v8  ;;  %v6736_v8 = vld [vmem:[#allocation5 + $0x11a4] ss:$8 sps:$4 sm:$0xff]  }
 0x1fa   :  { %4506 = vmatpush1.bf16.msra.mxu1 %v6635_v9  ;;  %v6731_v9 = vld [vmem:[#allocation5 + $0x7a0] ss:$8 sps:$4 sm:$0xff]  }
 0x1fb   :  { %4936 = vmatpush1.bf16.msra.mxu0 %v6638_v10  ;;  %4507 = vmatprep.subr.bf16.mxu1 %v6643_v11  ;;  %v6734_v10 = vld [vmem:[#allocation5 + $0x11a0] ss:$8 sps:$4 sm:$0xff]   ;;  %v6739_v11 = vld [vmem:[#allocation5 + $0x7b4] ss:$8 sps:$4 sm:$0xff]  }
 0x1fc   :  { %4937 = vmatprep.subr.bf16.mxu0 %v6646_v12  ;;  %v6742_v12 = vld [vmem:[#allocation5 + $0x11b4] ss:$8 sps:$4 sm:$0xff]  }
 0x1fe   :  { %4508 = vmatpush1.bf16.msra.mxu1 %v6641_v13  ;;  %v6737_v13 = vld [vmem:[#allocation5 + $0x7b0] ss:$8 sps:$4 sm:$0xff]  }
 0x1ff   :  { %4938 = vmatpush1.bf16.msra.mxu0 %v6644_v14  ;;  %4509 = vmatprep.subr.bf16.mxu1 %v6649_v15  ;;  %v6740_v14 = vld [vmem:[#allocation5 + $0x11b0] ss:$8 sps:$4 sm:$0xff]   ;;  %v6745_v15 = vld [vmem:[#allocation5 + $0x7c4] ss:$8 sps:$4 sm:$0xff]  }
 0x200   :  { %4939 = vmatprep.subr.bf16.mxu0 %v6652_v16  ;;  %v6748_v16 = vld [vmem:[#allocation5 + $0x11c4] ss:$8 sps:$4 sm:$0xff]  }
 0x202   :  { %4510 = vmatpush1.bf16.msra.mxu1 %v6647_v17  ;;  %v6743_v17 = vld [vmem:[#allocation5 + $0x7c0] ss:$8 sps:$4 sm:$0xff]  }
 0x203   :  { %4940 = vmatpush1.bf16.msra.mxu0 %v6650_v18  ;;  %4511 = vmatprep.subr.bf16.mxu1 %v6655_v19  ;;  %v6746_v18 = vld [vmem:[#allocation5 + $0x11c0] ss:$8 sps:$4 sm:$0xff]   ;;  %v6751_v19 = vld [vmem:[#allocation5 + $0x7d4] ss:$8 sps:$4 sm:$0xff]  }
 0x204   :  { %4941 = vmatprep.subr.bf16.mxu0 %v6658_v20  ;;  %v6754_v20 = vld [vmem:[#allocation5 + $0x11d4] ss:$8 sps:$4 sm:$0xff]  }
 0x206   :  { %4512 = vmatpush1.bf16.msra.mxu1 %v6653_v21  ;;  %v6749_v21 = vld [vmem:[#allocation5 + $0x7d0] ss:$8 sps:$4 sm:$0xff]  }
 0x207   :  { %4942 = vmatpush1.bf16.msra.mxu0 %v6656_v22  ;;  %4513 = vmatprep.subr.bf16.mxu1 %v6661_v23  ;;  %v6752_v22 = vld [vmem:[#allocation5 + $0x11d0] ss:$8 sps:$4 sm:$0xff]   ;;  %v6757_v23 = vld [vmem:[#allocation5 + $0x7e4] ss:$8 sps:$4 sm:$0xff]  }
 0x208   :  { %4943 = vmatprep.subr.bf16.mxu0 %v6664_v24  ;;  %v6760_v24 = vld [vmem:[#allocation5 + $0x11e4] ss:$8 sps:$4 sm:$0xff]  }
 0x20a   :  { %4514 = vmatpush1.bf16.msra.mxu1 %v6659_v25  ;;  %v6755_v25 = vld [vmem:[#allocation5 + $0x7e0] ss:$8 sps:$4 sm:$0xff]  }
 0x20b   :  { %4944 = vmatpush1.bf16.msra.mxu0 %v6662_v26  ;;  %4526 = vmatprep.subr.bf16.mxu1 %v6670_v27  ;;  %v6758_v26 = vld [vmem:[#allocation5 + $0x11e0] ss:$8 sps:$4 sm:$0xff]   ;;  %v6763_v27 = vld [vmem:[#allocation5 + $0x7f4] ss:$8 sps:$4 sm:$0xff]  }
 0x20c   :  { %4956 = vmatprep.subr.bf16.mxu0 %v6676_v28  ;;  %v6766_v28 = vld [vmem:[#allocation5 + $0x11f4] ss:$8 sps:$4 sm:$0xff]  }
 0x20d   :  { %4516 = vmatmul.mubr.bf16.vlgmr.msra.gmra.mrb[0].mxu1 %v6665_v29  ;;  %v6761_v29 = vld [vmem:[#allocation5 + $0x7f0] ss:$8 sps:$4 sm:$0xff]  }
 0x20e   :  { %4946 = vmatmul.mubr.bf16.vlgmr.msra.gmra.mrb[0].mxu0 %v6671_v30  ;;  %4527 = vmatpush1.bf16.msra.mxu1 %v6668_v31  ;;  %v6764_v30 = vld [vmem:[#allocation5 + $0x11f0] ss:$8 sps:$4 sm:$0xff]   ;;  %v6772_v31 = vld [vmem:[#allocation5 + $0x804] ss:$8 sps:$4 sm:$0xff]  }
 0x20f   :  { %4957 = vmatpush1.bf16.msra.mxu0 %v6674_v32  ;;  %4528 = vmatprep.subr.bf16.mxu1 %v6679_v33  ;;  %v6778_v32 = vld [vmem:[#allocation5 + $0x1204] ss:$8 sps:$4 sm:$0xff]   ;;  %v6767_v33 = vld [vmem:[#allocation3 + $0x38] ss:$164 sps:$4 sm:$0xff]  }
 0x210   :  { %4958 = vmatprep.subr.bf16.mxu0 %v6682_v34  ;;  %4558 = vmatprep.mubr.bf16.mxu1 %v6769_v35  ;;  %v6773_v34 = vld [vmem:[#allocation3 + $0x88] ss:$164 sps:$4 sm:$0xff]  }
 0x211   :  { %4988 = vmatprep.mubr.bf16.mxu0 %v6775_v36  ;;  %v6770_v35 = vld [vmem:[#allocation5 + $0x800] ss:$8 sps:$4 sm:$0xff]  }
 0x212   :  { %4529 = vmatpush1.bf16.msra.mxu1 %v6677_v37  ;;  %v6776_v36 = vld [vmem:[#allocation5 + $0x1200] ss:$8 sps:$4 sm:$0xff]   ;;  %v6781_v37 = vld [vmem:[#allocation5 + $0x814] ss:$8 sps:$4 sm:$0xff]  }
 0x213   :  { %4959 = vmatpush1.bf16.msra.mxu0 %v6680_v38  ;;  %4530 = vmatprep.subr.bf16.mxu1 %v6685_v39  ;;  %v6784_v38 = vld [vmem:[#allocation5 + $0x1214] ss:$8 sps:$4 sm:$0xff]  }
 0x214   :  { %4960 = vmatprep.subr.bf16.mxu0 %v6688_v40  ;;  %v6871_v39 = vld [vmem:[#allocation3 + $0x44] ss:$164 sps:$4 sm:$0xff]   ;;  %v6877_v40 = vld [vmem:[#allocation3 + $0x94] ss:$164 sps:$4 sm:$0xff]  }
 0x216   :  { %4531 = vmatpush1.bf16.msra.mxu1 %v6683_v41  ;;  %v6779_v41 = vld [vmem:[#allocation5 + $0x810] ss:$8 sps:$4 sm:$0xff]  }
 0x217   :  { %4961 = vmatpush1.bf16.msra.mxu0 %v6686_v42  ;;  %4532 = vmatprep.subr.bf16.mxu1 %v6691_v43  ;;  %v6782_v42 = vld [vmem:[#allocation5 + $0x1210] ss:$8 sps:$4 sm:$0xff]   ;;  %v6787_v43 = vld [vmem:[#allocation5 + $0x824] ss:$8 sps:$4 sm:$0xff]  }
 0x218   :  { %4962 = vmatprep.subr.bf16.mxu0 %v6694_v44  ;;  %v6790_v44 = vld [vmem:[#allocation5 + $0x1224] ss:$8 sps:$4 sm:$0xff]  }
 0x21a   :  { %4533 = vmatpush1.bf16.msra.mxu1 %v6689_v45  ;;  %v6785_v45 = vld [vmem:[#allocation5 + $0x820] ss:$8 sps:$4 sm:$0xff]  }
 0x21b   :  { %4963 = vmatpush1.bf16.msra.mxu0 %v6692_v46  ;;  %4534 = vmatprep.subr.bf16.mxu1 %v6697_v47  ;;  %v6788_v46 = vld [vmem:[#allocation5 + $0x1220] ss:$8 sps:$4 sm:$0xff]   ;;  %v6793_v47 = vld [vmem:[#allocation5 + $0x834] ss:$8 sps:$4 sm:$0xff]  }
 0x21c   :  { %4964 = vmatprep.subr.bf16.mxu0 %v6700_v48  ;;  %v6796_v48 = vld [vmem:[#allocation5 + $0x1234] ss:$8 sps:$4 sm:$0xff]  }
 0x21e   :  { %4535 = vmatpush1.bf16.msra.mxu1 %v6695_v49  ;;  %v6791_v49 = vld [vmem:[#allocation5 + $0x830] ss:$8 sps:$4 sm:$0xff]  }
 0x21f   :  { %4965 = vmatpush1.bf16.msra.mxu0 %v6698_v50  ;;  %4536 = vmatprep.subr.bf16.mxu1 %v6703_v51  ;;  %v6794_v50 = vld [vmem:[#allocation5 + $0x1230] ss:$8 sps:$4 sm:$0xff]   ;;  %v6799_v51 = vld [vmem:[#allocation5 + $0x844] ss:$8 sps:$4 sm:$0xff]  }
 0x220   :  { %4966 = vmatprep.subr.bf16.mxu0 %v6706_v52  ;;  %v6802_v52 = vld [vmem:[#allocation5 + $0x1244] ss:$8 sps:$4 sm:$0xff]  }
 0x222   :  { %4537 = vmatpush1.bf16.msra.mxu1 %v6701_v53  ;;  %v6797_v53 = vld [vmem:[#allocation5 + $0x840] ss:$8 sps:$4 sm:$0xff]  }
 0x223   :  { %4967 = vmatpush1.bf16.msra.mxu0 %v6704_v54  ;;  %4538 = vmatprep.subr.bf16.mxu1 %v6709_v55  ;;  %v6800_v54 = vld [vmem:[#allocation5 + $0x1240] ss:$8 sps:$4 sm:$0xff]   ;;  %v6805_v55 = vld [vmem:[#allocation5 + $0x854] ss:$8 sps:$4 sm:$0xff]  }
 0x224   :  { %4968 = vmatprep.subr.bf16.mxu0 %v6712_v56  ;;  %v6808_v56 = vld [vmem:[#allocation5 + $0x1254] ss:$8 sps:$4 sm:$0xff]  }
 0x226   :  { %4539 = vmatpush1.bf16.msra.mxu1 %v6707_v57  ;;  %v6803_v57 = vld [vmem:[#allocation5 + $0x850] ss:$8 sps:$4 sm:$0xff]  }
 0x227   :  { %4969 = vmatpush1.bf16.msra.mxu0 %v6710_v58  ;;  %4540 = vmatprep.subr.bf16.mxu1 %v6715_v59  ;;  %v6806_v58 = vld [vmem:[#allocation5 + $0x1250] ss:$8 sps:$4 sm:$0xff]   ;;  %v6811_v59 = vld [vmem:[#allocation5 + $0x864] ss:$8 sps:$4 sm:$0xff]  }
 0x228   :  { %4970 = vmatprep.subr.bf16.mxu0 %v6718_v60  ;;  %v6814_v60 = vld [vmem:[#allocation5 + $0x1264] ss:$8 sps:$4 sm:$0xff]  }
 0x22a   :  { %4541 = vmatpush1.bf16.msra.mxu1 %v6713_v61  ;;  %v6809_v61 = vld [vmem:[#allocation5 + $0x860] ss:$8 sps:$4 sm:$0xff]  }
 0x22b   :  { %4971 = vmatpush1.bf16.msra.mxu0 %v6716_v62  ;;  %4542 = vmatprep.subr.bf16.mxu1 %v6721_v63  ;;  %v6812_v62 = vld [vmem:[#allocation5 + $0x1260] ss:$8 sps:$4 sm:$0xff]   ;;  %v6817_v63 = vld [vmem:[#allocation5 + $0x874] ss:$8 sps:$4 sm:$0xff]  }
 0x22c   :  { %4972 = vmatprep.subr.bf16.mxu0 %v6724_v0  ;;  %v6820_v0 = vld [vmem:[#allocation5 + $0x1274] ss:$8 sps:$4 sm:$0xff]  }
 0x22e   :  { %4543 = vmatpush1.bf16.msra.mxu1 %v6719_v1  ;;  %v6815_v1 = vld [vmem:[#allocation5 + $0x870] ss:$8 sps:$4 sm:$0xff]  }
 0x22f   :  { %4973 = vmatpush1.bf16.msra.mxu0 %v6722_v2  ;;  %4544 = vmatprep.subr.bf16.mxu1 %v6727_v3  ;;  %v6818_v2 = vld [vmem:[#allocation5 + $0x1270] ss:$8 sps:$4 sm:$0xff]   ;;  %v6823_v3 = vld [vmem:[#allocation5 + $0x884] ss:$8 sps:$4 sm:$0xff]  }
 0x230   :  { %4974 = vmatprep.subr.bf16.mxu0 %v6730_v4  ;;  %v6826_v4 = vld [vmem:[#allocation5 + $0x1284] ss:$8 sps:$4 sm:$0xff]  }
 0x232   :  { %4545 = vmatpush1.bf16.msra.mxu1 %v6725_v5  ;;  %v6821_v5 = vld [vmem:[#allocation5 + $0x880] ss:$8 sps:$4 sm:$0xff]  }
 0x233   :  { %4975 = vmatpush1.bf16.msra.mxu0 %v6728_v6  ;;  %4546 = vmatprep.subr.bf16.mxu1 %v6733_v7  ;;  %v6824_v6 = vld [vmem:[#allocation5 + $0x1280] ss:$8 sps:$4 sm:$0xff]   ;;  %v6829_v7 = vld [vmem:[#allocation5 + $0x894] ss:$8 sps:$4 sm:$0xff]  }
 0x234   :  { %4976 = vmatprep.subr.bf16.mxu0 %v6736_v8  ;;  %v6832_v8 = vld [vmem:[#allocation5 + $0x1294] ss:$8 sps:$4 sm:$0xff]  }
 0x236   :  { %4547 = vmatpush1.bf16.msra.mxu1 %v6731_v9  ;;  %v6827_v9 = vld [vmem:[#allocation5 + $0x890] ss:$8 sps:$4 sm:$0xff]  }
 0x237   :  { %4977 = vmatpush1.bf16.msra.mxu0 %v6734_v10  ;;  %4548 = vmatprep.subr.bf16.mxu1 %v6739_v11  ;;  %v6830_v10 = vld [vmem:[#allocation5 + $0x1290] ss:$8 sps:$4 sm:$0xff]   ;;  %v6835_v11 = vld [vmem:[#allocation5 + $0x8a4] ss:$8 sps:$4 sm:$0xff]  }
 0x238   :  { %4978 = vmatprep.subr.bf16.mxu0 %v6742_v12  ;;  %v6838_v12 = vld [vmem:[#allocation5 + $0x12a4] ss:$8 sps:$4 sm:$0xff]  }
 0x23a   :  { %4549 = vmatpush1.bf16.msra.mxu1 %v6737_v13  ;;  %v6833_v13 = vld [vmem:[#allocation5 + $0x8a0] ss:$8 sps:$4 sm:$0xff]  }
 0x23b   :  { %4979 = vmatpush1.bf16.msra.mxu0 %v6740_v14  ;;  %4550 = vmatprep.subr.bf16.mxu1 %v6745_v15  ;;  %v6836_v14 = vld [vmem:[#allocation5 + $0x12a0] ss:$8 sps:$4 sm:$0xff]   ;;  %v6841_v15 = vld [vmem:[#allocation5 + $0x8b4] ss:$8 sps:$4 sm:$0xff]  }
 0x23c   :  { %4980 = vmatprep.subr.bf16.mxu0 %v6748_v16  ;;  %v6844_v16 = vld [vmem:[#allocation5 + $0x12b4] ss:$8 sps:$4 sm:$0xff]  }
 0x23e   :  { %4551 = vmatpush1.bf16.msra.mxu1 %v6743_v17  ;;  %v6839_v17 = vld [vmem:[#allocation5 + $0x8b0] ss:$8 sps:$4 sm:$0xff]  }
 0x23f   :  { %4981 = vmatpush1.bf16.msra.mxu0 %v6746_v18  ;;  %4552 = vmatprep.subr.bf16.mxu1 %v6751_v19  ;;  %v6842_v18 = vld [vmem:[#allocation5 + $0x12b0] ss:$8 sps:$4 sm:$0xff]   ;;  %v6847_v19 = vld [vmem:[#allocation5 + $0x8c4] ss:$8 sps:$4 sm:$0xff]  }
 0x240   :  { %4982 = vmatprep.subr.bf16.mxu0 %v6754_v20  ;;  %v6850_v20 = vld [vmem:[#allocation5 + $0x12c4] ss:$8 sps:$4 sm:$0xff]  }
 0x242   :  { %4553 = vmatpush1.bf16.msra.mxu1 %v6749_v21  ;;  %v6845_v21 = vld [vmem:[#allocation5 + $0x8c0] ss:$8 sps:$4 sm:$0xff]  }
 0x243   :  { %4983 = vmatpush1.bf16.msra.mxu0 %v6752_v22  ;;  %4554 = vmatprep.subr.bf16.mxu1 %v6757_v23  ;;  %v6848_v22 = vld [vmem:[#allocation5 + $0x12c0] ss:$8 sps:$4 sm:$0xff]   ;;  %v6853_v23 = vld [vmem:[#allocation5 + $0x8d4] ss:$8 sps:$4 sm:$0xff]  }
 0x244   :  { %4984 = vmatprep.subr.bf16.mxu0 %v6760_v24  ;;  %v6856_v24 = vld [vmem:[#allocation5 + $0x12d4] ss:$8 sps:$4 sm:$0xff]  }
 0x246   :  { %4555 = vmatpush1.bf16.msra.mxu1 %v6755_v25  ;;  %v6851_v25 = vld [vmem:[#allocation5 + $0x8d0] ss:$8 sps:$4 sm:$0xff]  }
 0x247   :  { %4985 = vmatpush1.bf16.msra.mxu0 %v6758_v26  ;;  %4556 = vmatprep.subr.bf16.mxu1 %v6763_v27  ;;  %v6854_v26 = vld [vmem:[#allocation5 + $0x12d0] ss:$8 sps:$4 sm:$0xff]   ;;  %v6859_v27 = vld [vmem:[#allocation5 + $0x8e4] ss:$8 sps:$4 sm:$0xff]  }
 0x248   :  { %4986 = vmatprep.subr.bf16.mxu0 %v6766_v28  ;;  %v6862_v28 = vld [vmem:[#allocation5 + $0x12e4] ss:$8 sps:$4 sm:$0xff]  }
 0x24a   :  { %4557 = vmatpush1.bf16.msra.mxu1 %v6761_v29  ;;  %v6857_v29 = vld [vmem:[#allocation5 + $0x8e0] ss:$8 sps:$4 sm:$0xff]  }
 0x24b   :  { %4987 = vmatpush1.bf16.msra.mxu0 %v6764_v30  ;;  %4569 = vmatprep.subr.bf16.mxu1 %v6772_v31  ;;  %v6860_v30 = vld [vmem:[#allocation5 + $0x12e0] ss:$8 sps:$4 sm:$0xff]   ;;  %v6865_v31 = vld [vmem:[#allocation5 + $0x8f4] ss:$8 sps:$4 sm:$0xff]  }
 0x24c   :  { %4999 = vmatprep.subr.bf16.mxu0 %v6778_v32  ;;  %v6868_v32 = vld [vmem:[#allocation5 + $0x12f4] ss:$8 sps:$4 sm:$0xff]  }
 0x24d   :  { %4559 = vmatmul.mubr.bf16.vlgmr.msra.gmra.mrb[0].mxu1 %v6767_v33  ;;  %v6863_v33 = vld [vmem:[#allocation5 + $0x8f0] ss:$8 sps:$4 sm:$0xff]  }
 0x24e   :  { %4989 = vmatmul.mubr.bf16.vlgmr.msra.gmra.mrb[0].mxu0 %v6773_v34  ;;  %4570 = vmatpush1.bf16.msra.mxu1 %v6770_v35  ;;  %v6866_v34 = vld [vmem:[#allocation5 + $0x12f0] ss:$8 sps:$4 sm:$0xff]   ;;  %v6874_v35 = vld [vmem:[#allocation5 + $0x904] ss:$8 sps:$4 sm:$0xff]  }
 0x24f   :  { %5000 = vmatpush1.bf16.msra.mxu0 %v6776_v36  ;;  %4571 = vmatprep.subr.bf16.mxu1 %v6781_v37  ;;  %v6880_v36 = vld [vmem:[#allocation5 + $0x1304] ss:$8 sps:$4 sm:$0xff]   ;;  %v6869_v37 = vld [vmem:[#allocation3 + $0x40] ss:$164 sps:$4 sm:$0xff]  }
 0x250   :  { %5001 = vmatprep.subr.bf16.mxu0 %v6784_v38  ;;  %4601 = vmatprep.mubr.bf16.mxu1 %v6871_v39  ;;  %v6875_v38 = vld [vmem:[#allocation3 + $0x90] ss:$164 sps:$4 sm:$0xff]  }
 0x251   :  { %5031 = vmatprep.mubr.bf16.mxu0 %v6877_v40  ;;  %v6872_v39 = vld [vmem:[#allocation5 + $0x900] ss:$8 sps:$4 sm:$0xff]  }
 0x252   :  { %4572 = vmatpush1.bf16.msra.mxu1 %v6779_v41  ;;  %v6878_v40 = vld [vmem:[#allocation5 + $0x1300] ss:$8 sps:$4 sm:$0xff]   ;;  %v6883_v41 = vld [vmem:[#allocation5 + $0x914] ss:$8 sps:$4 sm:$0xff]  }
 0x253   :  { %5002 = vmatpush1.bf16.msra.mxu0 %v6782_v42  ;;  %4573 = vmatprep.subr.bf16.mxu1 %v6787_v43  ;;  %v6886_v42 = vld [vmem:[#allocation5 + $0x1314] ss:$8 sps:$4 sm:$0xff]   ;;  %v6973_v43 = vld [vmem:[#allocation3 + $0x4c] ss:$164 sps:$4 sm:$0xff]  }
 0x254   :  { %5003 = vmatprep.subr.bf16.mxu0 %v6790_v44  ;;  %v6976_v44 = vld [vmem:[#allocation3 + $0x9c] ss:$164 sps:$4 sm:$0xff]  }
 0x256   :  { %4574 = vmatpush1.bf16.msra.mxu1 %v6785_v45  ;;  %v6881_v45 = vld [vmem:[#allocation5 + $0x910] ss:$8 sps:$4 sm:$0xff]  }
 0x257   :  { %5004 = vmatpush1.bf16.msra.mxu0 %v6788_v46  ;;  %4575 = vmatprep.subr.bf16.mxu1 %v6793_v47  ;;  %v6884_v46 = vld [vmem:[#allocation5 + $0x1310] ss:$8 sps:$4 sm:$0xff]   ;;  %v6889_v47 = vld [vmem:[#allocation5 + $0x924] ss:$8 sps:$4 sm:$0xff]  }
 0x258   :  { %5005 = vmatprep.subr.bf16.mxu0 %v6796_v48  ;;  %v6892_v48 = vld [vmem:[#allocation5 + $0x1324] ss:$8 sps:$4 sm:$0xff]  }
 0x25a   :  { %4576 = vmatpush1.bf16.msra.mxu1 %v6791_v49  ;;  %v6887_v49 = vld [vmem:[#allocation5 + $0x920] ss:$8 sps:$4 sm:$0xff]  }
 0x25b   :  { %5006 = vmatpush1.bf16.msra.mxu0 %v6794_v50  ;;  %4577 = vmatprep.subr.bf16.mxu1 %v6799_v51  ;;  %v6890_v50 = vld [vmem:[#allocation5 + $0x1320] ss:$8 sps:$4 sm:$0xff]   ;;  %v6895_v51 = vld [vmem:[#allocation5 + $0x934] ss:$8 sps:$4 sm:$0xff]  }
 0x25c   :  { %5007 = vmatprep.subr.bf16.mxu0 %v6802_v52  ;;  %v6898_v52 = vld [vmem:[#allocation5 + $0x1334] ss:$8 sps:$4 sm:$0xff]  }
 0x25e   :  { %4578 = vmatpush1.bf16.msra.mxu1 %v6797_v53  ;;  %v6893_v53 = vld [vmem:[#allocation5 + $0x930] ss:$8 sps:$4 sm:$0xff]  }
 0x25f   :  { %5008 = vmatpush1.bf16.msra.mxu0 %v6800_v54  ;;  %4579 = vmatprep.subr.bf16.mxu1 %v6805_v55  ;;  %v6896_v54 = vld [vmem:[#allocation5 + $0x1330] ss:$8 sps:$4 sm:$0xff]   ;;  %v6901_v55 = vld [vmem:[#allocation5 + $0x944] ss:$8 sps:$4 sm:$0xff]  }
 0x260   :  { %5009 = vmatprep.subr.bf16.mxu0 %v6808_v56  ;;  %v6904_v56 = vld [vmem:[#allocation5 + $0x1344] ss:$8 sps:$4 sm:$0xff]  }
 0x262   :  { %4580 = vmatpush1.bf16.msra.mxu1 %v6803_v57  ;;  %v6899_v57 = vld [vmem:[#allocation5 + $0x940] ss:$8 sps:$4 sm:$0xff]  }
 0x263   :  { %5010 = vmatpush1.bf16.msra.mxu0 %v6806_v58  ;;  %4581 = vmatprep.subr.bf16.mxu1 %v6811_v59  ;;  %v6902_v58 = vld [vmem:[#allocation5 + $0x1340] ss:$8 sps:$4 sm:$0xff]   ;;  %v6907_v59 = vld [vmem:[#allocation5 + $0x954] ss:$8 sps:$4 sm:$0xff]  }
 0x264   :  { %5011 = vmatprep.subr.bf16.mxu0 %v6814_v60  ;;  %v6910_v60 = vld [vmem:[#allocation5 + $0x1354] ss:$8 sps:$4 sm:$0xff]  }
 0x266   :  { %4582 = vmatpush1.bf16.msra.mxu1 %v6809_v61  ;;  %v6905_v61 = vld [vmem:[#allocation5 + $0x950] ss:$8 sps:$4 sm:$0xff]  }
 0x267   :  { %5012 = vmatpush1.bf16.msra.mxu0 %v6812_v62  ;;  %4583 = vmatprep.subr.bf16.mxu1 %v6817_v63  ;;  %v6908_v62 = vld [vmem:[#allocation5 + $0x1350] ss:$8 sps:$4 sm:$0xff]   ;;  %v6913_v63 = vld [vmem:[#allocation5 + $0x964] ss:$8 sps:$4 sm:$0xff]  }
 0x268   :  { %5013 = vmatprep.subr.bf16.mxu0 %v6820_v0  ;;  %v6916_v0 = vld [vmem:[#allocation5 + $0x1364] ss:$8 sps:$4 sm:$0xff]  }
 0x26a   :  { %4584 = vmatpush1.bf16.msra.mxu1 %v6815_v1  ;;  %v6911_v1 = vld [vmem:[#allocation5 + $0x960] ss:$8 sps:$4 sm:$0xff]  }
 0x26b   :  { %5014 = vmatpush1.bf16.msra.mxu0 %v6818_v2  ;;  %4585 = vmatprep.subr.bf16.mxu1 %v6823_v3  ;;  %v6914_v2 = vld [vmem:[#allocation5 + $0x1360] ss:$8 sps:$4 sm:$0xff]   ;;  %v6919_v3 = vld [vmem:[#allocation5 + $0x974] ss:$8 sps:$4 sm:$0xff]  }
 0x26c   :  { %5015 = vmatprep.subr.bf16.mxu0 %v6826_v4  ;;  %v6922_v4 = vld [vmem:[#allocation5 + $0x1374] ss:$8 sps:$4 sm:$0xff]  }
 0x26e   :  { %4586 = vmatpush1.bf16.msra.mxu1 %v6821_v5  ;;  %v6917_v5 = vld [vmem:[#allocation5 + $0x970] ss:$8 sps:$4 sm:$0xff]  }
 0x26f   :  { %5016 = vmatpush1.bf16.msra.mxu0 %v6824_v6  ;;  %4587 = vmatprep.subr.bf16.mxu1 %v6829_v7  ;;  %v6920_v6 = vld [vmem:[#allocation5 + $0x1370] ss:$8 sps:$4 sm:$0xff]   ;;  %v6925_v7 = vld [vmem:[#allocation5 + $0x984] ss:$8 sps:$4 sm:$0xff]  }
 0x270   :  { %5017 = vmatprep.subr.bf16.mxu0 %v6832_v8  ;;  %v6928_v8 = vld [vmem:[#allocation5 + $0x1384] ss:$8 sps:$4 sm:$0xff]  }
 0x272   :  { %4588 = vmatpush1.bf16.msra.mxu1 %v6827_v9  ;;  %v6923_v9 = vld [vmem:[#allocation5 + $0x980] ss:$8 sps:$4 sm:$0xff]  }
 0x273   :  { %5018 = vmatpush1.bf16.msra.mxu0 %v6830_v10  ;;  %4589 = vmatprep.subr.bf16.mxu1 %v6835_v11  ;;  %v6926_v10 = vld [vmem:[#allocation5 + $0x1380] ss:$8 sps:$4 sm:$0xff]   ;;  %v6931_v11 = vld [vmem:[#allocation5 + $0x994] ss:$8 sps:$4 sm:$0xff]  }
 0x274   :  { %5019 = vmatprep.subr.bf16.mxu0 %v6838_v12  ;;  %v6934_v12 = vld [vmem:[#allocation5 + $0x1394] ss:$8 sps:$4 sm:$0xff]  }
 0x276   :  { %4590 = vmatpush1.bf16.msra.mxu1 %v6833_v13  ;;  %v6929_v13 = vld [vmem:[#allocation5 + $0x990] ss:$8 sps:$4 sm:$0xff]  }
 0x277   :  { %5020 = vmatpush1.bf16.msra.mxu0 %v6836_v14  ;;  %4591 = vmatprep.subr.bf16.mxu1 %v6841_v15  ;;  %v6932_v14 = vld [vmem:[#allocation5 + $0x1390] ss:$8 sps:$4 sm:$0xff]   ;;  %v6937_v15 = vld [vmem:[#allocation5 + $0x9a4] ss:$8 sps:$4 sm:$0xff]  }
 0x278   :  { %5021 = vmatprep.subr.bf16.mxu0 %v6844_v16  ;;  %v6940_v16 = vld [vmem:[#allocation5 + $0x13a4] ss:$8 sps:$4 sm:$0xff]  }
 0x27a   :  { %4592 = vmatpush1.bf16.msra.mxu1 %v6839_v17  ;;  %v6935_v17 = vld [vmem:[#allocation5 + $0x9a0] ss:$8 sps:$4 sm:$0xff]  }
 0x27b   :  { %5022 = vmatpush1.bf16.msra.mxu0 %v6842_v18  ;;  %4593 = vmatprep.subr.bf16.mxu1 %v6847_v19  ;;  %v6938_v18 = vld [vmem:[#allocation5 + $0x13a0] ss:$8 sps:$4 sm:$0xff]   ;;  %v6943_v19 = vld [vmem:[#allocation5 + $0x9b4] ss:$8 sps:$4 sm:$0xff]  }
 0x27c   :  { %5023 = vmatprep.subr.bf16.mxu0 %v6850_v20  ;;  %v6946_v20 = vld [vmem:[#allocation5 + $0x13b4] ss:$8 sps:$4 sm:$0xff]  }
 0x27e   :  { %4594 = vmatpush1.bf16.msra.mxu1 %v6845_v21  ;;  %v6941_v21 = vld [vmem:[#allocation5 + $0x9b0] ss:$8 sps:$4 sm:$0xff]  }
 0x27f   :  { %5024 = vmatpush1.bf16.msra.mxu0 %v6848_v22  ;;  %4595 = vmatprep.subr.bf16.mxu1 %v6853_v23  ;;  %v6944_v22 = vld [vmem:[#allocation5 + $0x13b0] ss:$8 sps:$4 sm:$0xff]   ;;  %v6949_v23 = vld [vmem:[#allocation5 + $0x9c4] ss:$8 sps:$4 sm:$0xff]  }
 0x280   :  { %5025 = vmatprep.subr.bf16.mxu0 %v6856_v24  ;;  %v6952_v24 = vld [vmem:[#allocation5 + $0x13c4] ss:$8 sps:$4 sm:$0xff]  }
 0x282   :  { %4596 = vmatpush1.bf16.msra.mxu1 %v6851_v25  ;;  %v6947_v25 = vld [vmem:[#allocation5 + $0x9c0] ss:$8 sps:$4 sm:$0xff]  }
 0x283   :  { %5026 = vmatpush1.bf16.msra.mxu0 %v6854_v26  ;;  %4597 = vmatprep.subr.bf16.mxu1 %v6859_v27  ;;  %v6950_v26 = vld [vmem:[#allocation5 + $0x13c0] ss:$8 sps:$4 sm:$0xff]   ;;  %v6955_v27 = vld [vmem:[#allocation5 + $0x9d4] ss:$8 sps:$4 sm:$0xff]  }
 0x284   :  { %5027 = vmatprep.subr.bf16.mxu0 %v6862_v28  ;;  %v6958_v28 = vld [vmem:[#allocation5 + $0x13d4] ss:$8 sps:$4 sm:$0xff]  }
 0x286   :  { %4598 = vmatpush1.bf16.msra.mxu1 %v6857_v29  ;;  %v6953_v29 = vld [vmem:[#allocation5 + $0x9d0] ss:$8 sps:$4 sm:$0xff]  }
 0x287   :  { %5028 = vmatpush1.bf16.msra.mxu0 %v6860_v30  ;;  %4599 = vmatprep.subr.bf16.mxu1 %v6865_v31  ;;  %v6956_v30 = vld [vmem:[#allocation5 + $0x13d0] ss:$8 sps:$4 sm:$0xff]   ;;  %v6961_v31 = vld [vmem:[#allocation5 + $0x9e4] ss:$8 sps:$4 sm:$0xff]  }
 0x288   :  { %5029 = vmatprep.subr.bf16.mxu0 %v6868_v32  ;;  %v6964_v32 = vld [vmem:[#allocation5 + $0x13e4] ss:$8 sps:$4 sm:$0xff]  }
 0x28a   :  { %4600 = vmatpush1.bf16.msra.mxu1 %v6863_v33  ;;  %v6959_v33 = vld [vmem:[#allocation5 + $0x9e0] ss:$8 sps:$4 sm:$0xff]  }
 0x28b   :  { %5030 = vmatpush1.bf16.msra.mxu0 %v6866_v34  ;;  %4612 = vmatprep.subr.bf16.mxu1 %v6874_v35  ;;  %v6962_v34 = vld [vmem:[#allocation5 + $0x13e0] ss:$8 sps:$4 sm:$0xff]   ;;  %v6967_v35 = vld [vmem:[#allocation5 + $0x9f4] ss:$8 sps:$4 sm:$0xff]  }
 0x28c   :  { %5042 = vmatprep.subr.bf16.mxu0 %v6880_v36  ;;  %v6970_v36 = vld [vmem:[#allocation5 + $0x13f4] ss:$8 sps:$4 sm:$0xff]  }
 0x28d   :  { %4602 = vmatmul.mubr.bf16.vlgmr.msra.gmra.mrb[0].mxu1 %v6869_v37  ;;  %v6965_v37 = vld [vmem:[#allocation5 + $0x9f0] ss:$8 sps:$4 sm:$0xff]  }
 0x28e   :  { %5032 = vmatmul.mubr.bf16.vlgmr.msra.gmra.mrb[0].mxu0 %v6875_v38  ;;  %4613 = vmatpush1.bf16.msra.mxu1 %v6872_v39  ;;  %v6968_v38 = vld [vmem:[#allocation5 + $0x13f0] ss:$8 sps:$4 sm:$0xff]   ;;  %v6979_v39 = vld [vmem:[#allocation5 + $0x1404] ss:$8 sps:$4 sm:$0xff]  }
 0x28f   :  { %5043 = vmatpush1.bf16.msra.mxu0 %v6878_v40  ;;  %4614 = vmatprep.subr.bf16.mxu1 %v6883_v41  ;;  %v6971_v40 = vld [vmem:[#allocation3 + $0x48] ss:$164 sps:$4 sm:$0xff]   ;;  %v6974_v41 = vld [vmem:[#allocation3 + $0x98] ss:$164 sps:$4 sm:$0xff]  }
 0x290   :  { %5044 = vmatprep.subr.bf16.mxu0 %v6886_v42  ;;  %4644 = vmatprep.mubr.bf16.mxu1 %v6973_v43  ;;  %v6977_v42 = vld [vmem:[#allocation5 + $0x1400] ss:$8 sps:$4 sm:$0xff]   ;;  %v6982_v43 = vld [vmem:[#allocation5 + $0x1414] ss:$8 sps:$4 sm:$0xff]  }
 0x291   :  { %5074 = vmatprep.mubr.bf16.mxu0 %v6976_v44  ;;  %v6980_v44 = vld [vmem:[#allocation5 + $0x1410] ss:$8 sps:$4 sm:$0xff]  }
 0x292   :  { %4615 = vmatpush1.bf16.msra.mxu1 %v6881_v45  ;;  %v7100_v45 = vmov 0  }
 0x293   :  { %5045 = vmatpush1.bf16.msra.mxu0 %v6884_v46  ;;  %4616 = vmatprep.subr.bf16.mxu1 %v6889_v47  ;;  %v6985_v46 = vld [vmem:[#allocation5 + $0x1424] ss:$8 sps:$4 sm:$0xff]   ;;  %v6983_v47 = vld [vmem:[#allocation5 + $0x1420] ss:$8 sps:$4 sm:$0xff]  }
 0x294   :  { %5046 = vmatprep.subr.bf16.mxu0 %v6892_v48  ;;  %v6988_v48 = vld [vmem:[#allocation5 + $0x1434] ss:$8 sps:$4 sm:$0xff]  }
 0x296   :  { %4617 = vmatpush1.bf16.msra.mxu1 %v6887_v49  ;;  %v6986_v49 = vld [vmem:[#allocation5 + $0x1430] ss:$8 sps:$4 sm:$0xff]  }
 0x297   :  { %5047 = vmatpush1.bf16.msra.mxu0 %v6890_v50  ;;  %4618 = vmatprep.subr.bf16.mxu1 %v6895_v51  ;;  %v6989_v50 = vld [vmem:[#allocation3 + $0xa0] ss:$164 sps:$4 sm:$0xff]   ;;  %v766_v51 = vlaneseq }
 0x298   :  { %5048 = vmatprep.subr.bf16.mxu0 %v6898_v52 }
 0x29a   :  { %4619 = vmatpush1.bf16.msra.mxu1 %v6893_v53 }
 0x29b   :  { %5049 = vmatpush1.bf16.msra.mxu0 %v6896_v54  ;;  %4620 = vmatprep.subr.bf16.mxu1 %v6901_v55  ;;  %v767_v55 = vshrl.u32 %v766_v51, 7 }
 0x29c   :  { %5050 = vmatprep.subr.bf16.mxu0 %v6904_v56 }
 0x29e   :  { %4621 = vmatpush1.bf16.msra.mxu1 %v6899_v57  ;;  %v768_v57 = vsub.s32 0, %v767_v55 }
 0x29f   :  { %5051 = vmatpush1.bf16.msra.mxu0 %v6902_v58  ;;  %4622 = vmatprep.subr.bf16.mxu1 %v6907_v59  ;;  %v764_v58 = vld [vmem:[#allocation7] sm:$0x3]  ;;  %v772_v59 = vsub.s32 1, %v767_v55 }
 0x2a0   :  { %5052 = vmatprep.subr.bf16.mxu0 %v6910_v60  ;;  %v769_v60 = vrot.slane %v764_v58, %v768_v57 }
 0x2a2   :  { %4623 = vmatpush1.bf16.msra.mxu1 %v6905_v61  ;;  %v773_v61 = vrot.slane %v764_v58, %v772_v59 }
 0x2a3   :  { %5053 = vmatpush1.bf16.msra.mxu0 %v6908_v62  ;;  %4624 = vmatprep.subr.bf16.mxu1 %v6913_v63 }
 0x2a4   :  { %5054 = vmatprep.subr.bf16.mxu0 %v6916_v0 }
 0x2a6   :  { %4625 = vmatpush1.bf16.msra.mxu1 %v6911_v1 }
 0x2a7   :  { %5055 = vmatpush1.bf16.msra.mxu0 %v6914_v2  ;;  %4626 = vmatprep.subr.bf16.mxu1 %v6919_v3 }
 0x2a8   :  { %5056 = vmatprep.subr.bf16.mxu0 %v6922_v4 }
 0x2aa   :  { %4627 = vmatpush1.bf16.msra.mxu1 %v6917_v5 }
 0x2ab   :  { %5057 = vmatpush1.bf16.msra.mxu0 %v6920_v6  ;;  %4628 = vmatprep.subr.bf16.mxu1 %v6925_v7 }
 0x2ac   :  { %5058 = vmatprep.subr.bf16.mxu0 %v6928_v8 }
 0x2ae   :  { %4629 = vmatpush1.bf16.msra.mxu1 %v6923_v9 }
 0x2af   :  { %5059 = vmatpush1.bf16.msra.mxu0 %v6926_v10  ;;  %4630 = vmatprep.subr.bf16.mxu1 %v6931_v11  ;;  %v5132_v10 = vld [vmem:[#allocation8] sm:$0x3] }
 0x2b0   :  { %5060 = vmatprep.subr.bf16.mxu0 %v6934_v12  ;;  %v5137_v11 = vrot.slane %v5132_v10, %v768_v57  ;;  %v5141_v12 = vrot.slane %v5132_v10, %v772_v59 }
 0x2b2   :  { %4631 = vmatpush1.bf16.msra.mxu1 %v6929_v13 }
 0x2b3   :  { %5061 = vmatpush1.bf16.msra.mxu0 %v6932_v14  ;;  %4632 = vmatprep.subr.bf16.mxu1 %v6937_v15 }
 0x2b4   :  { %5062 = vmatprep.subr.bf16.mxu0 %v6940_v16 }
 0x2b6   :  { %4633 = vmatpush1.bf16.msra.mxu1 %v6935_v17 }
 0x2b7   :  { %5063 = vmatpush1.bf16.msra.mxu0 %v6938_v18  ;;  %4634 = vmatprep.subr.bf16.mxu1 %v6943_v19 }
 0x2b8   :  { %5064 = vmatprep.subr.bf16.mxu0 %v6946_v20 }
 0x2ba   :  { %4635 = vmatpush1.bf16.msra.mxu1 %v6941_v21 }
 0x2bb   :  { %5065 = vmatpush1.bf16.msra.mxu0 %v6944_v22  ;;  %4636 = vmatprep.subr.bf16.mxu1 %v6949_v23  ;;  %v5863_v23 = vld [vmem:[#allocation2] ss:$0 sm:$0xff] }
 0x2bc   :  { %5066 = vmatprep.subr.bf16.mxu0 %v6952_v24 }
 0x2be   :  { %4637 = vmatpush1.bf16.msra.mxu1 %v6947_v25 }
 0x2bf   :  { %5067 = vmatpush1.bf16.msra.mxu0 %v6950_v26  ;;  %4638 = vmatprep.subr.bf16.mxu1 %v6955_v27 }
 0x2c0   :  { %5068 = vmatprep.subr.bf16.mxu0 %v6958_v28 }
 0x2c2   :  { %4639 = vmatpush1.bf16.msra.mxu1 %v6953_v29 }
 0x2c3   :  { %5069 = vmatpush1.bf16.msra.mxu0 %v6956_v30  ;;  %4640 = vmatprep.subr.bf16.mxu1 %v6961_v31 }
 0x2c4   :  { %5070 = vmatprep.subr.bf16.mxu0 %v6964_v32 }
 0x2c6   :  { %4641 = vmatpush1.bf16.msra.mxu1 %v6959_v33 }
 0x2c7   :  { %5071 = vmatpush1.bf16.msra.mxu0 %v6962_v34  ;;  %4642 = vmatprep.subr.bf16.mxu1 %v6967_v35 }
 0x2c8   :  { %5072 = vmatprep.subr.bf16.mxu0 %v6970_v36 }
 0x2ca   :  { %4643 = vmatpush1.bf16.msra.mxu1 %v6965_v37 }
 0x2cb   :  { %5073 = vmatpush1.bf16.msra.mxu0 %v6968_v38 }
 0x2cc   :  { %5085 = vmatprep.subr.bf16.mxu0 %v6979_v39 }
 0x2cd   :  { %4645 = vmatmul.mubr.bf16.vlgmr.msra.gmra.mrb[0].mxu1 %v6971_v40 }
 0x2ce   :  { %5075 = vmatmul.mubr.bf16.vlgmr.msra.gmra.mrb[0].mxu0 %v6974_v41 }
 0x2cf   :  { %5086 = vmatpush1.bf16.msra.mxu0 %v6977_v42  ;;  %5117 = vmatprep.mubr.bf16.mxu0 %v7100_v45 }
 0x2d0   :  { %5087 = vmatprep.subr.bf16.mxu0 %v6982_v43 }
 0x2d3   :  { %5088 = vmatpush1.bf16.msra.mxu0 %v6980_v44 }
 0x2d4   :  { %5089 = vmatprep.subr.bf16.mxu0 %v6985_v46 }
 0x2d7   :  { %5090 = vmatpush1.bf16.msra.mxu0 %v6983_v47 }
 0x2d8   :  { %5091 = vmatprep.subr.bf16.mxu0 %v6988_v48 }
 0x2db   :  { %5092 = vmatpush1.bf16.msra.mxu0 %v6986_v49 }
 0x2de   :  { %5862 = vmatmul.mubr.msk.bf16.vlgmr.msra.gmra.mrb[0].mxu0 %vm4221_vm0, %v6989_v50 }
 0x3a0   :  { %v4646_v52 = vpop.f32.mrb[0].mxu1 }
 0x3a1   :  { %v4648_v53 = vpop.f32.mrb[1].mxu1  ;;  %v5864_v62 = vadd.f32 %v4646_v52, %v769_v60 }
 0x3a2   :  { %v4650_v54 = vpop.f32.mrb[2].mxu1  ;;  %v5866_v63 = vadd.f32 %v4648_v53, %v773_v61 }
 0x3a3   :  { %v4652_v56 = vpop.f32.mrb[3].mxu1  ;;  %v5868_v1 = vadd.f32 %v4650_v54, %v769_v60 }
 0x3a4   :  { %v5870_v4 = vadd.f32 %v4652_v56, %v773_v61 }
 0x3b1   :  { %v5119_v0 = vpop.f32.mrb[0].mxu0 }
 0x3b2   :  { %v5865_v2 = vadd.f32 %v5864_v62, %v5119_v0  ;;  %v5121_v3 = vpop.f32.mrb[1].mxu0 }
 0x3b3   :  { %v5867_v5 = vadd.f32 %v5866_v63, %v5121_v3  ;;  %v5123_v6 = vpop.f32.mrb[2].mxu0 }
 0x3b4   :  { %6990 = vtanh.f32 %v5865_v2  ;;  %v5869_v7 = vadd.f32 %v5868_v1, %v5123_v6  ;;  %v5125_v8 = vpop.f32.mrb[3].mxu0 }
 0x3b5   :  { %6992 = vtanh.f32 %v5867_v5  ;;  %v5871_v9 = vadd.f32 %v5870_v4, %v5125_v8 }
 0x3b6   :  { %6994 = vtanh.f32 %v5869_v7 }
 0x3b7   :  { %6996 = vtanh.f32 %v5871_v9 }
 0x3be   :  { %v6991_v13 = vpop.eup %6990 }
 0x3bf   :  { %v6993_v14 = vpop.eup %6992  ;;  %v5144_v15 = vmul.f32 %v6991_v13, %v5137_v11 }
 0x3c0   :  { %v6995_v16 = vpop.eup %6994  ;;  %v5145_v17 = vmul.f32 %v6993_v14, %v5141_v12 }
 0x3c1   :  { %v6997_v18 = vpop.eup %6996  ;;  %v5146_v19 = vmul.f32 %v6995_v16, %v5137_v11 }
 0x3c2   :  { %v5148_v20 = vadd.f32 %v5145_v17, %v5144_v15  ;;  %v5147_v21 = vmul.f32 %v6997_v18, %v5141_v12 }
 0x3c4   :  { %5149 = vadd.xlane.f32.xlu0 %v5148_v20  ;;  %v5151_v22 = vadd.f32 %v5147_v21, %v5146_v19 }
 0x3c8   :  { %5152 = vadd.xlane.f32.xlu0 %v5151_v22 }
 0x451   :  { %v5150_v24 = vpop.xlane.xlu0 %5149 }
 0x452   :  { %v5161_v25 = vadd.f32 %v5863_v23, %v5150_v24 }
 0x454   :  { %5164 = vst.msk [vmem:[%s7193_s5] sm:$0xff] %vm5163_vm1, %v5161_v25 }
 0x455   :  { %v5153_v26 = vpop.xlane.xlu0 %5152 }
 0x456   :  { %v5162_v27 = vadd.f32 %v5863_v23, %v5153_v26 }
 0x458   :  { %5165 = vst.msk [vmem:[%s7193_s5 + $0x8] sm:$0xff] %vm5163_vm1, %v5162_v27 }
 0x459   :  { %5170 = vsyncpa [#allocation4], 1 }
 0x45a   :  { %5171 = vsyncpa [#allocation6], 1 }
 0x45b   :  { %5172 = vsyncpa [#allocation9], 1 }

</bundles_post_ra>
